<compile_context>
chip_gen: v6e
topology: v6e:2x2x1
jax: 0.10.0
libtpu: 0.0.40
codegen_flags: <defaults>
</compile_context>

<pallas_src>
import functools

import jax
import jax.numpy as jnp
from jax.experimental import pallas as pl
from jax.experimental.pallas import tpu as pltpu


def _round_up(n, m):
    return ((n + m - 1) // m) * m


def _default_tiles(n_padded):
    """Row tile (tm) and contraction tile (tk) for the A-stream reduction.

    Production guidance (HBM-bound bf16 A stream, double-buffered):
      v5e (16 MiB default scoped VMEM): tm=256, tk=2048
      v6e (raise vmem_limit_bytes):     tm=512, tk=4096
      v7x (64 MiB physical VMEM):       tm=512, tk=2048
    and pass pltpu.CompilerParams(vmem_limit_bytes=...) accordingly.
    Small demo graphs just use one 128-aligned tile.
    """
    tm = min(256, n_padded)
    tk = min(512, n_padded)
    return tm, tk


# ---------------------------------------------------------------------------
# Phase 1: per-row projections  XWl = X @ Wl (bf16 out), root = X @ Wr + b
# ---------------------------------------------------------------------------
def project_kernel(x_ref, wl_ref, wr_ref, b_ref, xwl_ref, root_ref):
    x = x_ref[...]
    xwl = jnp.dot(x, wl_ref[...], preferred_element_type=jnp.float32)
    xwl_ref[...] = xwl.astype(xwl_ref.dtype)  # bf16 operand for the A stream
    root = jnp.dot(x, wr_ref[...], preferred_element_type=jnp.float32)
    root_ref[...] = root + b_ref[...]         # bias (lin_l) folded in here


# ---------------------------------------------------------------------------
# Phase 2: tiled A-stream reduction  out = act( A @ XWl + root )
# ---------------------------------------------------------------------------
def aggregate_kernel(a_ref, xwl_ref, root_ref, o_ref, acc_ref, *, activation):
    k = pl.program_id(1)

    @pl.when(k == 0)
    def _():
        acc_ref[...] = root_ref[...]

    acc_ref[...] += jnp.dot(a_ref[...], xwl_ref[...],
                            preferred_element_type=jnp.float32)

    @pl.when(k == pl.num_programs(1) - 1)
    def _():
        h = acc_ref[...]
        if activation == "relu":
            h = jnp.maximum(h, 0.0)
        elif activation == "softmax":
            m = jnp.max(h, axis=1, keepdims=True)
            e = jnp.exp(h - m)
            h = e / jnp.sum(e, axis=1, keepdims=True)
        o_ref[...] = h.astype(o_ref.dtype)


def sage_layer(A_bf16, x, wl, wr, b, activation, *, tm, tk):
    """One fused SAGEConv layer on a zero-padded graph of Np nodes."""
    Np, F = x.shape
    H = wl.shape[1]
    assert Np % tm == 0 and Np % tk == 0

    # --- Phase 1: projections (tiny matmuls, row-parallel) -----------------
    xwl, root = pl.pallas_call(
        project_kernel,
        out_shape=(jax.ShapeDtypeStruct((Np, H), jnp.bfloat16),
                   jax.ShapeDtypeStruct((Np, H), jnp.float32)),
        grid=(Np // tm,),
        in_specs=[
            pl.BlockSpec((tm, F), lambda i: (i, 0)),
            pl.BlockSpec((F, H), lambda i: (0, 0)),
            pl.BlockSpec((F, H), lambda i: (0, 0)),
            pl.BlockSpec((1, H), lambda i: (0, 0)),
        ],
        out_specs=(pl.BlockSpec((tm, H), lambda i: (i, 0)),
                   pl.BlockSpec((tm, H), lambda i: (i, 0))),
        compiler_params=pltpu.CompilerParams(
            dimension_semantics=("parallel",)),
    )(x, wl, wr, b)

    # --- Phase 2: A-stream reduction with f32 VMEM accumulator -------------
    kernel = functools.partial(aggregate_kernel, activation=activation)
    out = pl.pallas_call(
        kernel,
        out_shape=jax.ShapeDtypeStruct((Np, H), jnp.float32),
        grid=(Np // tm, Np // tk),                      # reduction axis last
        in_specs=[
            pl.BlockSpec((tm, tk), lambda i, k: (i, k)),   # bf16 A tile
            pl.BlockSpec((tk, H), lambda i, k: (k, 0)),    # bf16 XWl tile
            pl.BlockSpec((tm, H), lambda i, k: (i, 0)),    # f32 root tile
        ],
        out_specs=pl.BlockSpec((tm, H), lambda i, k: (i, 0)),
        scratch_shapes=[pltpu.VMEM((tm, H), jnp.float32)],
        compiler_params=pltpu.CompilerParams(
            dimension_semantics=("parallel", "arbitrary")),
    )(A_bf16, xwl, root)
    return out


def build_norm_adjacency(edge_index, num_nodes, padded_nodes):
    """Dense row-normalized adjacency (mean aggregation, flow src->dst), bf16.

    Built directly at the padded size; padded rows/cols stay zero.  Scatter is
    glue code (not the hot path).
    """
    src, dst = edge_index[0], edge_index[1]
    A = jnp.zeros((padded_nodes, padded_nodes), jnp.float32).at[dst, src].add(1.0)
    deg = jnp.sum(A, axis=1, keepdims=True)
    A = A / jnp.maximum(deg, 1.0)     # isolated nodes aggregate to 0 (PyG)
    return A.astype(jnp.bfloat16)


def sageconvnet_forward(x, edge_index, params, *, tm=None, tk=None):
    """Full SAGEConvNet.forward (eval mode)."""
    N, _ = x.shape
    Np = _round_up(N, 128)
    if tm is None or tk is None:
        tm, tk = _default_tiles(Np)
    Np = _round_up(Np, max(tm, tk))

    A = build_norm_adjacency(edge_index, N, Np)
    xp = jnp.pad(x, ((0, Np - N), (0, 0)))

    h = sage_layer(A, xp, params["w1_l"], params["w1_r"], params["b1"],
                   "relu", tm=tm, tk=tk)
    # dropout: identity in eval mode (see TODO at top of file)
    out = sage_layer(A, h, params["w2_l"], params["w2_r"], params["b2"],
                     "softmax", tm=tm, tk=tk)
    return out[:N]


def init_params(key, f_in, hidden, n_classes):
    ks = jax.random.split(key, 4)

    def glorot(k, shape):
        fan_in, fan_out = shape
        lim = (6.0 / (fan_in + fan_out)) ** 0.5
        return jax.random.uniform(k, shape, jnp.float32, -lim, lim)

    return {
        "w1_l": glorot(ks[0], (f_in, hidden)),
        "w1_r": glorot(ks[1], (f_in, hidden)),
        "b1": jnp.zeros((1, hidden), jnp.float32),
        "w2_l": glorot(ks[2], (hidden, n_classes)),
        "w2_r": glorot(ks[3], (hidden, n_classes)),
        "b2": jnp.zeros((1, n_classes), jnp.float32),
    }


def _reference_forward(x, edge_index, params):
    """Plain-JAX f32 reference (original module semantics)."""
    N = x.shape[0]
    src, dst = edge_index[0], edge_index[1]
    A = jnp.zeros((N, N), jnp.float32).at[dst, src].add(1.0)
    deg = jnp.sum(A, axis=1, keepdims=True)
    A = A / jnp.maximum(deg, 1.0)
    h = A @ (x @ params["w1_l"]) + x @ params["w1_r"] + params["b1"]
    h = jnp.maximum(h, 0.0)
    z = A @ (h @ params["w2_l"]) + h @ params["w2_r"] + params["b2"]
    return jax.nn.softmax(z, axis=1)


if __name__ == "__main__":
    # Small synthetic graph (stand-in for Pubmed: feats=32, hidden=16, classes=4).
    # N=200 is deliberately NOT 128-aligned to exercise padding; tm=tk=128 gives
    # a (2, 2) grid so multi-tile accumulation + pipelining are exercised.
    N, F_IN, HIDDEN, N_CLASSES, N_EDGES = 200, 32, 16, 4, 800

    key = jax.random.PRNGKey(0)
    k_x, k_e, k_p = jax.random.split(key, 3)

    x = jax.random.normal(k_x, (N, F_IN), jnp.float32)
    edge_index = jax.random.randint(k_e, (2, N_EDGES), 0, N, jnp.int32)
    params = init_params(k_p, F_IN, HIDDEN, N_CLASSES)

    fwd = jax.jit(sageconvnet_forward, static_argnames=("tm", "tk"))
    out = fwd(x, edge_index, params, tm=128, tk=128)
    out = jax.block_until_ready(out)

    ref = _reference_forward(x, edge_index, params)
    assert out.shape == (N, N_CLASSES)
    # bf16 adjacency / XWl streaming -> small deviation from the f32 reference.
    assert jnp.allclose(out, ref, atol=3e-2, rtol=3e-2), "mismatch vs reference"
    assert jnp.allclose(jnp.sum(out, axis=1), 1.0, atol=1e-5), \
        "softmax rows must sum to 1"

    print("KERNEL_OK")
</pallas_src>

<mosaic_0001>
module attributes {stable_mosaic.version = 11 : i64} {
  func.func private @main(%arg0: i32) attributes {dimension_semantics = [#tpu.dimension_semantics<core_parallel>], iteration_bounds = array<i64: 2>, tpu.core_type = #tpu.core_type<sc_scalar_subcore>, window_params = []} {
    return
  }
}

module attributes {stable_mosaic.version = 11 : i64} {
  func.func private @main(%arg0: i32) attributes {dimension_semantics = [#tpu.dimension_semantics<core_parallel>], iteration_bounds = array<i64: 2>, tpu.core_type = #tpu.core_type<sc_scalar_subcore>, window_params = []} {
    return
  }
}

module attributes {stable_mosaic.version = 11 : i64} {
  func.func @project_kernel(%arg0: i32, %arg1: memref<128x32xf32, #tpu.memory_space<vmem>>, %arg2: memref<32x16xf32, #tpu.memory_space<vmem>>, %arg3: memref<32x16xf32, #tpu.memory_space<vmem>>, %arg4: memref<1x16xf32, #tpu.memory_space<vmem>>, %arg5: memref<128x16xbf16, #tpu.memory_space<vmem>>, %arg6: memref<128x16xf32, #tpu.memory_space<vmem>>) attributes {dimension_semantics = [#tpu.dimension_semantics<parallel>], iteration_bounds = array<i64: 2>, scalar_prefetch = 0 : i64, scratch_operands = 0 : i64, tpu.core_type = #tpu.core_type<tc>, window_params = [{transform_indices = @transform_0, window_bounds = array<i64: 128, 32>}, {pipeline_mode = #tpu.pipeline_mode<synchronous>, transform_indices = @transform_1, window_bounds = array<i64: 32, 16>}, {pipeline_mode = #tpu.pipeline_mode<synchronous>, transform_indices = @transform_2, window_bounds = array<i64: 32, 16>}, {pipeline_mode = #tpu.pipeline_mode<synchronous>, transform_indices = @transform_3, window_bounds = array<i64: 1, 16>}, {transform_indices = @transform_4, window_bounds = array<i64: 128, 16>}, {transform_indices = @transform_5, window_bounds = array<i64: 128, 16>}]} {
    %c0 = arith.constant 0 : index
    %c0_0 = arith.constant 0 : index
    %0 = vector.load %arg1[%c0, %c0_0] : memref<128x32xf32, #tpu.memory_space<vmem>>, vector<128x32xf32>
    %c0_1 = arith.constant 0 : index
    %c0_2 = arith.constant 0 : index
    %1 = vector.load %arg2[%c0_1, %c0_2] : memref<32x16xf32, #tpu.memory_space<vmem>>, vector<32x16xf32>
    %cst = arith.constant dense<0.000000e+00> : vector<128x16xf32>
    %2 = tpu.matmul %0, %1, %cst {dimension_numbers = #tpu.dot_dimension_numbers<[1], [0], [0], [1], [0, 0, 1, 1], [], []>} : vector<128x32xf32>, vector<32x16xf32>, vector<128x16xf32> -> vector<128x16xf32>
    %3 = arith.truncf %2 : vector<128x16xf32> to vector<128x16xbf16>
    %c0_3 = arith.constant 0 : index
    %c0_4 = arith.constant 0 : index
    %4 = vector.load %arg5[%c0_3, %c0_4] : memref<128x16xbf16, #tpu.memory_space<vmem>>, vector<128x16xbf16>
    tpu.vector_store %arg5[%c0_3, %c0_4], %3 {strides = array<i32>} : memref<128x16xbf16, #tpu.memory_space<vmem>>, vector<128x16xbf16>,
    %c0_5 = arith.constant 0 : index
    %c0_6 = arith.constant 0 : index
    %5 = vector.load %arg3[%c0_5, %c0_6] : memref<32x16xf32, #tpu.memory_space<vmem>>, vector<32x16xf32>
    %cst_7 = arith.constant dense<0.000000e+00> : vector<128x16xf32>
    %6 = tpu.matmul %0, %5, %cst_7 {dimension_numbers = #tpu.dot_dimension_numbers<[1], [0], [0], [1], [0, 0, 1, 1], [], []>} : vector<128x32xf32>, vector<32x16xf32>, vector<128x16xf32> -> vector<128x16xf32>
    %c0_8 = arith.constant 0 : index
    %c0_9 = arith.constant 0 : index
    %7 = vector.load %arg4[%c0_8, %c0_9] : memref<1x16xf32, #tpu.memory_space<vmem>>, vector<1x16xf32>
    %8 = vector.broadcast %7 : vector<1x16xf32> to vector<128x16xf32>
    %9 = arith.addf %6, %8 : vector<128x16xf32>
    %c0_10 = arith.constant 0 : index
    %c0_11 = arith.constant 0 : index
    %10 = vector.load %arg6[%c0_10, %c0_11] : memref<128x16xf32, #tpu.memory_space<vmem>>, vector<128x16xf32>
    tpu.vector_store %arg6[%c0_10, %c0_11], %9 {strides = array<i32>} : memref<128x16xf32, #tpu.memory_space<vmem>>, vector<128x16xf32>,
    return
  }
  func.func @transform_0(%arg0: i32) -> (i32, i32) {
    %c0_i32 = arith.constant 0 : i32
    %c0_i32_0 = arith.constant 0 : i32
    return %arg0, %c0_i32 : i32, i32
  }
  func.func @transform_1(%arg0: i32) -> (i32, i32) {
    %c0_i32 = arith.constant 0 : i32
    %c0_i32_0 = arith.constant 0 : i32
    %c0_i32_1 = arith.constant 0 : i32
    return %c0_i32, %c0_i32_0 : i32, i32
  }
  func.func @transform_2(%arg0: i32) -> (i32, i32) {
    %c0_i32 = arith.constant 0 : i32
    %c0_i32_0 = arith.constant 0 : i32
    %c0_i32_1 = arith.constant 0 : i32
    return %c0_i32, %c0_i32_0 : i32, i32
  }
  func.func @transform_3(%arg0: i32) -> (i32, i32) {
    %c0_i32 = arith.constant 0 : i32
    %c0_i32_0 = arith.constant 0 : i32
    %c0_i32_1 = arith.constant 0 : i32
    return %c0_i32, %c0_i32_0 : i32, i32
  }
  func.func @transform_4(%arg0: i32) -> (i32, i32) {
    %c0_i32 = arith.constant 0 : i32
    %c0_i32_0 = arith.constant 0 : i32
    return %arg0, %c0_i32 : i32, i32
  }
  func.func @transform_5(%arg0: i32) -> (i32, i32) {
    %c0_i32 = arith.constant 0 : i32
    %c0_i32_0 = arith.constant 0 : i32
    return %arg0, %c0_i32 : i32, i32
  }
}

module attributes {stable_mosaic.version = 11 : i64} {
  func.func @aggregate_kernel(%arg0: i32, %arg1: i32, %arg2: memref<128x128xbf16, #tpu.memory_space<vmem>>, %arg3: memref<128x16xbf16, #tpu.memory_space<vmem>>, %arg4: memref<128x16xf32, #tpu.memory_space<vmem>>, %arg5: memref<128x16xf32, #tpu.memory_space<vmem>>, %arg6: memref<128x16xf32, #tpu.memory_space<vmem>>) attributes {dimension_semantics = [#tpu.dimension_semantics<parallel>, #tpu.dimension_semantics<arbitrary>], iteration_bounds = array<i64: 2, 2>, scalar_prefetch = 0 : i64, scratch_operands = 1 : i64, tpu.core_type = #tpu.core_type<tc>, window_params = [{transform_indices = @transform_0, window_bounds = array<i64: 128, 128>}, {transform_indices = @transform_1, window_bounds = array<i64: 128, 16>}, {transform_indices = @transform_2, window_bounds = array<i64: 128, 16>}, {transform_indices = @transform_3, window_bounds = array<i64: 128, 16>}]} {
    %c0_i32 = arith.constant 0 : i32
    %0 = arith.cmpi eq, %arg1, %c0_i32 : i32
    %1 = arith.extui %0 : i1 to i32
    %c0_i32_0 = arith.constant 0 : i32
    %2 = arith.cmpi ne, %1, %c0_i32_0 : i32
    scf.if %2 {
      %c0_9 = arith.constant 0 : index
      %c0_10 = arith.constant 0 : index
      %12 = vector.load %arg4[%c0_9, %c0_10] : memref<128x16xf32, #tpu.memory_space<vmem>>, vector<128x16xf32>
      %c0_11 = arith.constant 0 : index
      %c0_12 = arith.constant 0 : index
      %13 = vector.load %arg6[%c0_11, %c0_12] : memref<128x16xf32, #tpu.memory_space<vmem>>, vector<128x16xf32>
      tpu.vector_store %arg6[%c0_11, %c0_12], %12 {strides = array<i32>} : memref<128x16xf32, #tpu.memory_space<vmem>>, vector<128x16xf32>,
    } else {
    }
    %c0 = arith.constant 0 : index
    %c0_1 = arith.constant 0 : index
    %3 = vector.load %arg6[%c0, %c0_1] : memref<128x16xf32, #tpu.memory_space<vmem>>, vector<128x16xf32>
    %c0_2 = arith.constant 0 : index
    %c0_3 = arith.constant 0 : index
    %4 = vector.load %arg2[%c0_2, %c0_3] : memref<128x128xbf16, #tpu.memory_space<vmem>>, vector<128x128xbf16>
    %c0_4 = arith.constant 0 : index
    %c0_5 = arith.constant 0 : index
    %5 = vector.load %arg3[%c0_4, %c0_5] : memref<128x16xbf16, #tpu.memory_space<vmem>>, vector<128x16xbf16>
    %cst = arith.constant dense<0.000000e+00> : vector<128x16xf32>
    %6 = tpu.matmul %4, %5, %cst {dimension_numbers = #tpu.dot_dimension_numbers<[1], [0], [0], [1], [0, 0, 1, 1], [], []>} : vector<128x128xbf16>, vector<128x16xbf16>, vector<128x16xf32> -> vector<128x16xf32>
    %7 = arith.addf %3, %6 : vector<128x16xf32>
    %c0_6 = arith.constant 0 : index
    %c0_7 = arith.constant 0 : index
    %8 = vector.load %arg6[%c0_6, %c0_7] : memref<128x16xf32, #tpu.memory_space<vmem>>, vector<128x16xf32>
    tpu.vector_store %arg6[%c0_6, %c0_7], %7 {strides = array<i32>} : memref<128x16xf32, #tpu.memory_space<vmem>>, vector<128x16xf32>,
    %c1_i32 = arith.constant 1 : i32
    %9 = arith.cmpi eq, %arg1, %c1_i32 : i32
    %10 = arith.extui %9 : i1 to i32
    %c0_i32_8 = arith.constant 0 : i32
    %11 = arith.cmpi ne, %10, %c0_i32_8 : i32
    scf.if %11 {
      %c0_9 = arith.constant 0 : index
      %c0_10 = arith.constant 0 : index
      %12 = vector.load %arg6[%c0_9, %c0_10] : memref<128x16xf32, #tpu.memory_space<vmem>>, vector<128x16xf32>
      %cst_11 = arith.constant 0.000000e+00 : f32
      %13 = vector.broadcast %cst_11 : f32 to vector<128x16xf32>
      %14 = arith.maximumf %12, %13 : vector<128x16xf32>
      %c0_12 = arith.constant 0 : index
      %c0_13 = arith.constant 0 : index
      %15 = vector.load %arg5[%c0_12, %c0_13] : memref<128x16xf32, #tpu.memory_space<vmem>>, vector<128x16xf32>
      tpu.vector_store %arg5[%c0_12, %c0_13], %14 {strides = array<i32>} : memref<128x16xf32, #tpu.memory_space<vmem>>, vector<128x16xf32>,
    } else {
    }
    return
  }
  func.func @transform_0(%arg0: i32, %arg1: i32) -> (i32, i32) {
    %c0_i32 = arith.constant 0 : i32
    return %arg0, %arg1 : i32, i32
  }
  func.func @transform_1(%arg0: i32, %arg1: i32) -> (i32, i32) {
    %c0_i32 = arith.constant 0 : i32
    %c0_i32_0 = arith.constant 0 : i32
    return %arg1, %c0_i32 : i32, i32
  }
  func.func @transform_2(%arg0: i32, %arg1: i32) -> (i32, i32) {
    %c0_i32 = arith.constant 0 : i32
    %c0_i32_0 = arith.constant 0 : i32
    return %arg0, %c0_i32 : i32, i32
  }
  func.func @transform_3(%arg0: i32, %arg1: i32) -> (i32, i32) {
    %c0_i32 = arith.constant 0 : i32
    %c0_i32_0 = arith.constant 0 : i32
    return %arg0, %c0_i32 : i32, i32
  }
}

module attributes {stable_mosaic.version = 11 : i64} {
  func.func @project_kernel(%arg0: i32, %arg1: memref<128x16xf32, #tpu.memory_space<vmem>>, %arg2: memref<16x4xf32, #tpu.memory_space<vmem>>, %arg3: memref<16x4xf32, #tpu.memory_space<vmem>>, %arg4: memref<1x4xf32, #tpu.memory_space<vmem>>, %arg5: memref<128x4xbf16, #tpu.memory_space<vmem>>, %arg6: memref<128x4xf32, #tpu.memory_space<vmem>>) attributes {dimension_semantics = [#tpu.dimension_semantics<parallel>], iteration_bounds = array<i64: 2>, scalar_prefetch = 0 : i64, scratch_operands = 0 : i64, tpu.core_type = #tpu.core_type<tc>, window_params = [{transform_indices = @transform_0, window_bounds = array<i64: 128, 16>}, {pipeline_mode = #tpu.pipeline_mode<synchronous>, transform_indices = @transform_1, window_bounds = array<i64: 16, 4>}, {pipeline_mode = #tpu.pipeline_mode<synchronous>, transform_indices = @transform_2, window_bounds = array<i64: 16, 4>}, {pipeline_mode = #tpu.pipeline_mode<synchronous>, transform_indices = @transform_3, window_bounds = array<i64: 1, 4>}, {transform_indices = @transform_4, window_bounds = array<i64: 128, 4>}, {transform_indices = @transform_5, window_bounds = array<i64: 128, 4>}]} {
    %c0 = arith.constant 0 : index
    %c0_0 = arith.constant 0 : index
    %0 = vector.load %arg1[%c0, %c0_0] : memref<128x16xf32, #tpu.memory_space<vmem>>, vector<128x16xf32>
    %c0_1 = arith.constant 0 : index
    %c0_2 = arith.constant 0 : index
    %1 = vector.load %arg2[%c0_1, %c0_2] : memref<16x4xf32, #tpu.memory_space<vmem>>, vector<16x4xf32>
    %cst = arith.constant dense<0.000000e+00> : vector<128x4xf32>
    %2 = tpu.matmul %0, %1, %cst {dimension_numbers = #tpu.dot_dimension_numbers<[1], [0], [0], [1], [0, 0, 1, 1], [], []>} : vector<128x16xf32>, vector<16x4xf32>, vector<128x4xf32> -> vector<128x4xf32>
    %3 = arith.truncf %2 : vector<128x4xf32> to vector<128x4xbf16>
    %c0_3 = arith.constant 0 : index
    %c0_4 = arith.constant 0 : index
    %4 = vector.load %arg5[%c0_3, %c0_4] : memref<128x4xbf16, #tpu.memory_space<vmem>>, vector<128x4xbf16>
    tpu.vector_store %arg5[%c0_3, %c0_4], %3 {strides = array<i32>} : memref<128x4xbf16, #tpu.memory_space<vmem>>, vector<128x4xbf16>,
    %c0_5 = arith.constant 0 : index
    %c0_6 = arith.constant 0 : index
    %5 = vector.load %arg3[%c0_5, %c0_6] : memref<16x4xf32, #tpu.memory_space<vmem>>, vector<16x4xf32>
    %cst_7 = arith.constant dense<0.000000e+00> : vector<128x4xf32>
    %6 = tpu.matmul %0, %5, %cst_7 {dimension_numbers = #tpu.dot_dimension_numbers<[1], [0], [0], [1], [0, 0, 1, 1], [], []>} : vector<128x16xf32>, vector<16x4xf32>, vector<128x4xf32> -> vector<128x4xf32>
    %c0_8 = arith.constant 0 : index
    %c0_9 = arith.constant 0 : index
    %7 = vector.load %arg4[%c0_8, %c0_9] : memref<1x4xf32, #tpu.memory_space<vmem>>, vector<1x4xf32>
    %8 = vector.broadcast %7 : vector<1x4xf32> to vector<128x4xf32>
    %9 = arith.addf %6, %8 : vector<128x4xf32>
    %c0_10 = arith.constant 0 : index
    %c0_11 = arith.constant 0 : index
    %10 = vector.load %arg6[%c0_10, %c0_11] : memref<128x4xf32, #tpu.memory_space<vmem>>, vector<128x4xf32>
    tpu.vector_store %arg6[%c0_10, %c0_11], %9 {strides = array<i32>} : memref<128x4xf32, #tpu.memory_space<vmem>>, vector<128x4xf32>,
    return
  }
  func.func @transform_0(%arg0: i32) -> (i32, i32) {
    %c0_i32 = arith.constant 0 : i32
    %c0_i32_0 = arith.constant 0 : i32
    return %arg0, %c0_i32 : i32, i32
  }
  func.func @transform_1(%arg0: i32) -> (i32, i32) {
    %c0_i32 = arith.constant 0 : i32
    %c0_i32_0 = arith.constant 0 : i32
    %c0_i32_1 = arith.constant 0 : i32
    return %c0_i32, %c0_i32_0 : i32, i32
  }
  func.func @transform_2(%arg0: i32) -> (i32, i32) {
    %c0_i32 = arith.constant 0 : i32
    %c0_i32_0 = arith.constant 0 : i32
    %c0_i32_1 = arith.constant 0 : i32
    return %c0_i32, %c0_i32_0 : i32, i32
  }
  func.func @transform_3(%arg0: i32) -> (i32, i32) {
    %c0_i32 = arith.constant 0 : i32
    %c0_i32_0 = arith.constant 0 : i32
    %c0_i32_1 = arith.constant 0 : i32
    return %c0_i32, %c0_i32_0 : i32, i32
  }
  func.func @transform_4(%arg0: i32) -> (i32, i32) {
    %c0_i32 = arith.constant 0 : i32
    %c0_i32_0 = arith.constant 0 : i32
    return %arg0, %c0_i32 : i32, i32
  }
  func.func @transform_5(%arg0: i32) -> (i32, i32) {
    %c0_i32 = arith.constant 0 : i32
    %c0_i32_0 = arith.constant 0 : i32
    return %arg0, %c0_i32 : i32, i32
  }
}

module attributes {stable_mosaic.version = 11 : i64} {
  func.func @aggregate_kernel(%arg0: i32, %arg1: i32, %arg2: memref<128x128xbf16, #tpu.memory_space<vmem>>, %arg3: memref<128x4xbf16, #tpu.memory_space<vmem>>, %arg4: memref<128x4xf32, #tpu.memory_space<vmem>>, %arg5: memref<128x4xf32, #tpu.memory_space<vmem>>, %arg6: memref<128x4xf32, #tpu.memory_space<vmem>>) attributes {dimension_semantics = [#tpu.dimension_semantics<parallel>, #tpu.dimension_semantics<arbitrary>], iteration_bounds = array<i64: 2, 2>, scalar_prefetch = 0 : i64, scratch_operands = 1 : i64, tpu.core_type = #tpu.core_type<tc>, window_params = [{transform_indices = @transform_0, window_bounds = array<i64: 128, 128>}, {transform_indices = @transform_1, window_bounds = array<i64: 128, 4>}, {transform_indices = @transform_2, window_bounds = array<i64: 128, 4>}, {transform_indices = @transform_3, window_bounds = array<i64: 128, 4>}]} {
    %c0_i32 = arith.constant 0 : i32
    %0 = arith.cmpi eq, %arg1, %c0_i32 : i32
    %1 = arith.extui %0 : i1 to i32
    %c0_i32_0 = arith.constant 0 : i32
    %2 = arith.cmpi ne, %1, %c0_i32_0 : i32
    scf.if %2 {
      %c0_9 = arith.constant 0 : index
      %c0_10 = arith.constant 0 : index
      %12 = vector.load %arg4[%c0_9, %c0_10] : memref<128x4xf32, #tpu.memory_space<vmem>>, vector<128x4xf32>
      %c0_11 = arith.constant 0 : index
      %c0_12 = arith.constant 0 : index
      %13 = vector.load %arg6[%c0_11, %c0_12] : memref<128x4xf32, #tpu.memory_space<vmem>>, vector<128x4xf32>
      tpu.vector_store %arg6[%c0_11, %c0_12], %12 {strides = array<i32>} : memref<128x4xf32, #tpu.memory_space<vmem>>, vector<128x4xf32>,
    } else {
    }
    %c0 = arith.constant 0 : index
    %c0_1 = arith.constant 0 : index
    %3 = vector.load %arg6[%c0, %c0_1] : memref<128x4xf32, #tpu.memory_space<vmem>>, vector<128x4xf32>
    %c0_2 = arith.constant 0 : index
    %c0_3 = arith.constant 0 : index
    %4 = vector.load %arg2[%c0_2, %c0_3] : memref<128x128xbf16, #tpu.memory_space<vmem>>, vector<128x128xbf16>
    %c0_4 = arith.constant 0 : index
    %c0_5 = arith.constant 0 : index
    %5 = vector.load %arg3[%c0_4, %c0_5] : memref<128x4xbf16, #tpu.memory_space<vmem>>, vector<128x4xbf16>
    %cst = arith.constant dense<0.000000e+00> : vector<128x4xf32>
    %6 = tpu.matmul %4, %5, %cst {dimension_numbers = #tpu.dot_dimension_numbers<[1], [0], [0], [1], [0, 0, 1, 1], [], []>} : vector<128x128xbf16>, vector<128x4xbf16>, vector<128x4xf32> -> vector<128x4xf32>
    %7 = arith.addf %3, %6 : vector<128x4xf32>
    %c0_6 = arith.constant 0 : index
    %c0_7 = arith.constant 0 : index
    %8 = vector.load %arg6[%c0_6, %c0_7] : memref<128x4xf32, #tpu.memory_space<vmem>>, vector<128x4xf32>
    tpu.vector_store %arg6[%c0_6, %c0_7], %7 {strides = array<i32>} : memref<128x4xf32, #tpu.memory_space<vmem>>, vector<128x4xf32>,
    %c1_i32 = arith.constant 1 : i32
    %9 = arith.cmpi eq, %arg1, %c1_i32 : i32
    %10 = arith.extui %9 : i1 to i32
    %c0_i32_8 = arith.constant 0 : i32
    %11 = arith.cmpi ne, %10, %c0_i32_8 : i32
    scf.if %11 {
      %c0_9 = arith.constant 0 : index
      %c0_10 = arith.constant 0 : index
      %12 = vector.load %arg6[%c0_9, %c0_10] : memref<128x4xf32, #tpu.memory_space<vmem>>, vector<128x4xf32>
      %cst_11 = arith.constant dense<0xFF800000> : vector<128xf32>
      %13 = vector.multi_reduction <maximumf>, %12, %cst_11 [1] : vector<128x4xf32> to vector<128xf32>
      %14 = vector.shape_cast %13 : vector<128xf32> to vector<128x1xf32>
      %15 = vector.broadcast %14 : vector<128x1xf32> to vector<128x4xf32>
      %16 = arith.subf %12, %15 : vector<128x4xf32>
      %17 = math.exp %16 : vector<128x4xf32>
      %cst_12 = arith.constant dense<0.000000e+00> : vector<128xf32>
      %18 = vector.multi_reduction <add>, %17, %cst_12 [1] : vector<128x4xf32> to vector<128xf32>
      %19 = vector.shape_cast %18 : vector<128xf32> to vector<128x1xf32>
      %20 = vector.broadcast %19 : vector<128x1xf32> to vector<128x4xf32>
      %21 = arith.divf %17, %20 : vector<128x4xf32>
      %c0_13 = arith.constant 0 : index
      %c0_14 = arith.constant 0 : index
      %22 = vector.load %arg5[%c0_13, %c0_14] : memref<128x4xf32, #tpu.memory_space<vmem>>, vector<128x4xf32>
      tpu.vector_store %arg5[%c0_13, %c0_14], %21 {strides = array<i32>} : memref<128x4xf32, #tpu.memory_space<vmem>>, vector<128x4xf32>,
    } else {
    }
    return
  }
  func.func @transform_0(%arg0: i32, %arg1: i32) -> (i32, i32) {
    %c0_i32 = arith.constant 0 : i32
    return %arg0, %arg1 : i32, i32
  }
  func.func @transform_1(%arg0: i32, %arg1: i32) -> (i32, i32) {
    %c0_i32 = arith.constant 0 : i32
    %c0_i32_0 = arith.constant 0 : i32
    return %arg1, %c0_i32 : i32, i32
  }
  func.func @transform_2(%arg0: i32, %arg1: i32) -> (i32, i32) {
    %c0_i32 = arith.constant 0 : i32
    %c0_i32_0 = arith.constant 0 : i32
    return %arg0, %c0_i32 : i32, i32
  }
  func.func @transform_3(%arg0: i32, %arg1: i32) -> (i32, i32) {
    %c0_i32 = arith.constant 0 : i32
    %c0_i32_0 = arith.constant 0 : i32
    return %arg0, %c0_i32 : i32, i32
  }
}

</mosaic_0001>

<bundles_post_ra>
// kernel: sageconvnet_forward.4
= control target key start
LH: loop header
LB: loop body
LE: loop exit
PB: predicated region body
PF: predicated region fallthrough
CT: control target
= control target key end

     0   :  { %s1028_s18 = smov 0   ;;  %s1219_s0 = inlined_call_operand.vmem [shape: f32[256,32], index: 0, kind: input, shape index: {}]   ;;  %s1220_s1 = inlined_call_operand.vmem [shape: f32[32,16], index: 1, kind: input, shape index: {}]   ;;  %s1221_s2 = inlined_call_operand.vmem [shape: f32[32,16], index: 2, kind: input, shape index: {}]   ;;  %s1222_s3 = inlined_call_operand.vmem [shape: f32[1,16], index: 3, kind: input, shape index: {}]   ;;  %s1223_s4 = inlined_call_operand.vmem [shape: bf16[256,16], index: 4, kind: output, shape index: {0}]   ;;  %s1224_s5 = inlined_call_operand.vmem [shape: f32[256,16], index: 5, kind: output, shape index: {1}]  }
   0x1 LB: > { %s800_s19 = sadd.s32 4294967295, %s996_s18   ;;  %p804_p0 = scmp.ge.s32.totalorder %s996_s18, 1  ;;  %s996_s18 = sphi %s1028_s18, %s16_s18  }
   0x2   : > { %p191_p1 = scmp.lt.s32.totalorder %s996_s18, 3 }
   0x4   : > { %p192_p2 = pnand %p804_p0, %p191_p1 }
   0x5   : > { %s805_s26 = sshll.u32 (!%p192_p2), %s800_s19, 4 }
   0x6   : > { %195 = sbr.rel (%p192_p2) target bundleno = 248 (0xf8), region = 36  ;;  %p225_p3 = scmp.lt.s32.totalorder (!%p192_p2), %s805_s26, 31 }
   0xb   : > { %v261_v0 = vld [vmem:[%s1220_s1 + $0x18] sm:$0xff]  ;;  %v260_v2 = vld [vmem:[%s1220_s1 + $0x10] sm:$0xff]  ;;  %v259_v4 = vld [vmem:[%s1220_s1 + $0x8] sm:$0xff]  ;;  %s1226_s26 = smov (!%p225_p3, %s805_s26), 31  ;;  %vm262_vm0 = vcmask 261120   ;;  %vm520_vm1 = vcmask 125952  }
   0xc   : > { %v540_v1 = vld [vmem:[%s1221_s2 + $0x18] sm:$0xff]  ;;  %918 = vmatprep.subr.mxu0 %v261_v0  ;;  %v539_v3 = vld [vmem:[%s1221_s2 + $0x10] sm:$0xff]  ;;  %v538_v5 = vld [vmem:[%s1221_s2 + $0x8] sm:$0xff]  ;;  %s806_s12 = sshll.u32 %s1226_s26, 3  ;;  %s808_s16 = sshll.u32 %s1226_s26, 2  ;;  %vm693_vm2 = vcmask 130048  }
   0xd   : > { %950 = vmatprep.subr.mxu1 %v540_v1  ;;  %919 = vmatpush3.msra.mxu0 %v261_v0  ;;  %v258_v6 = vld [vmem:[%s1220_s1] sm:$0xff]  ;;  %s1068_s15 = scalar_lea.vmem %s1219_s0, %s806_s12  ;;  %s1129_s22 = scalar_lea.vmem %s1224_s5, %s806_s12 }
   0xe   : > { %951 = vmatpush3.msra.mxu1 %v540_v1  ;;  %920 = vmatprep.subr.mxu0 %v260_v2  ;;  %v537_v7 = vld [vmem:[%s1221_s2] sm:$0xff]  ;;  %v243_v9 = vld [vmem:[%s1068_s15 + $0x8] sm:$0xff]  ;;  %v244_v10 = vld [vmem:[%s1068_s15 + $0x10] sm:$0xff]  ;;  %s1134_s25 = scalar_lea.vmem %s1223_s4, %s808_s16 }
   0xf   : > { %952 = vmatprep.subr.mxu1 %v539_v3  ;;  %921 = vmatpush3.msra.mxu0 %v260_v2  ;;  %v242_v8 = vld [vmem:[%s1068_s15] sm:$0xff]  ;;  %v245_v11 = vld [vmem:[%s1068_s15 + $0x18] sm:$0xff]  ;;  %v247_v13 = vld [vmem:[%s1068_s15 + $0x28] sm:$0xff] }
  0x10   : > { %953 = vmatpush3.msra.mxu1 %v539_v3  ;;  %922 = vmatprep.subr.mxu0 %v259_v4  ;;  %v246_v12 = vld [vmem:[%s1068_s15 + $0x20] sm:$0xff]  ;;  %v248_v14 = vld [vmem:[%s1068_s15 + $0x30] sm:$0xff]  ;;  %v249_v15 = vld [vmem:[%s1068_s15 + $0x38] sm:$0xff] }
  0x11   : > { %954 = vmatprep.subr.mxu1 %v538_v5  ;;  %923 = vmatpush3.msra.mxu0 %v259_v4  ;;  %v250_v16 = vld [vmem:[%s1068_s15 + $0x40] sm:$0xff]  ;;  %v251_v17 = vld [vmem:[%s1068_s15 + $0x48] sm:$0xff]  ;;  %v252_v18 = vld [vmem:[%s1068_s15 + $0x50] sm:$0xff] }
  0x12   : > { %955 = vmatpush3.msra.mxu1 %v538_v5  ;;  %924 = vmatprep.subr.mxu0 %v258_v6  ;;  %v253_v19 = vld [vmem:[%s1068_s15 + $0x58] sm:$0xff]  ;;  %v254_v20 = vld [vmem:[%s1068_s15 + $0x60] sm:$0xff]  ;;  %v255_v21 = vld [vmem:[%s1068_s15 + $0x68] sm:$0xff] }
  0x13   : > { %956 = vmatprep.subr.mxu1 %v537_v7  ;;  %925 = vmatpush3.msra.mxu0 %v258_v6  ;;  %v256_v22 = vld [vmem:[%s1068_s15 + $0x70] sm:$0xff]  ;;  %v257_v23 = vld [vmem:[%s1068_s15 + $0x78] sm:$0xff]  ;;  %v1122_v24 = vld [vmem:[%s1222_s3] ss:$0 sm:$0xff] }
  0x14   : > { %926 = vmatprep.mubr.msk.f32.mxu0 %vm262_vm0, %v242_v8  ;;  %957 = vmatpush3.msra.mxu1 %v537_v7 }
  0x15   : > { %958 = vmatprep.mubr.msk.f32.mxu1 %vm262_vm0, %v242_v8  ;;  %927 = vmatmul.mubr.msk.f32.vlgmr.msra.gmra.mxu0 %vm262_vm0, %v243_v9 }
  0x16   : > { %959 = vmatmul.mubr.msk.f32.vlgmr.msra.gmra.mxu1 %vm262_vm0, %v243_v9  ;;  %929 = vmatprep.mubr.msk.f32.mxu0 %vm262_vm0, %v244_v10 }
  0x17   : > { %961 = vmatprep.mubr.msk.f32.mxu1 %vm262_vm0, %v244_v10 }
  0x19   : > { %930 = vmatmul.mubr.msk.f32.gmra.mxu0 %vm262_vm0, %v245_v11 }
  0x1a   : > { %962 = vmatmul.mubr.msk.f32.gmra.mxu1 %vm262_vm0, %v245_v11  ;;  %932 = vmatprep.mubr.msk.f32.mxu0 %vm262_vm0, %v246_v12 }
  0x1b   : > { %964 = vmatprep.mubr.msk.f32.mxu1 %vm262_vm0, %v246_v12 }
  0x1d   : > { %933 = vmatmul.mubr.msk.f32.gmra.mxu0 %vm262_vm0, %v247_v13 }
  0x1e   : > { %965 = vmatmul.mubr.msk.f32.gmra.mxu1 %vm262_vm0, %v247_v13  ;;  %935 = vmatprep.mubr.msk.f32.mxu0 %vm262_vm0, %v248_v14 }
  0x1f   : > { %967 = vmatprep.mubr.msk.f32.mxu1 %vm262_vm0, %v248_v14 }
  0x21   : > { %936 = vmatmul.mubr.msk.f32.gmra.mxu0 %vm262_vm0, %v249_v15 }
  0x22   : > { %968 = vmatmul.mubr.msk.f32.gmra.mxu1 %vm262_vm0, %v249_v15  ;;  %938 = vmatprep.mubr.msk.f32.mxu0 %vm262_vm0, %v250_v16 }
  0x23   : > { %970 = vmatprep.mubr.msk.f32.mxu1 %vm262_vm0, %v250_v16 }
  0x25   : > { %939 = vmatmul.mubr.msk.f32.gmra.mxu0 %vm262_vm0, %v251_v17 }
  0x26   : > { %971 = vmatmul.mubr.msk.f32.gmra.mxu1 %vm262_vm0, %v251_v17  ;;  %941 = vmatprep.mubr.msk.f32.mxu0 %vm262_vm0, %v252_v18 }
  0x27   : > { %973 = vmatprep.mubr.msk.f32.mxu1 %vm262_vm0, %v252_v18 }
  0x29   : > { %942 = vmatmul.mubr.msk.f32.gmra.mxu0 %vm262_vm0, %v253_v19 }
  0x2a   : > { %974 = vmatmul.mubr.msk.f32.gmra.mxu1 %vm262_vm0, %v253_v19  ;;  %944 = vmatprep.mubr.msk.f32.mxu0 %vm262_vm0, %v254_v20 }
  0x2b   : > { %976 = vmatprep.mubr.msk.f32.mxu1 %vm262_vm0, %v254_v20 }
  0x2d   : > { %945 = vmatmul.mubr.msk.f32.gmra.mxu0 %vm262_vm0, %v255_v21 }
  0x2e   : > { %977 = vmatmul.mubr.msk.f32.gmra.mxu1 %vm262_vm0, %v255_v21  ;;  %947 = vmatprep.mubr.msk.f32.mxu0 %vm262_vm0, %v256_v22 }
  0x2f   : > { %979 = vmatprep.mubr.msk.f32.mxu1 %vm262_vm0, %v256_v22 }
  0x31   : > { %948 = vmatmul.mubr.msk.f32.gmra.mxu0 %vm262_vm0, %v257_v23 }
  0x32   : > { %980 = vmatmul.mubr.msk.f32.gmra.mxu1 %vm262_vm0, %v257_v23 }
  0xd5   : > { %v928_v25 = vpop.f32.mrf.mxu0 }
  0xd6   : > { %v960_v26 = vpop.f32.mrf.mxu1  ;;  %v863_v27 = vpack.c.bf16 %v928_v25, %v928_v25 }
  0xd7   : > { %v620_v28 = vadd.f32 %v960_v26, %v1122_v24  ;;  %v377_v29 = vpop.f32.mrf.mxu0 }
  0xd8   : > { %v614_v30 = vpop.f32.mrf.mxu1  ;;  %522 = vst.msk [vmem:[%s1134_s25 + $0x4] sm:$0xf] %vm520_vm1, %v863_v27  ;;  %v862_v31 = vpack.c.bf16 %v377_v29, %v377_v29 }
  0xd9   : > { %695 = vst.msk [vmem:[%s1129_s22 + $0x8] sm:$0xff] %vm693_vm2, %v620_v28  ;;  %v615_v32 = vadd.f32 %v1122_v24, %v614_v30  ;;  %v931_v33 = vpop.f32.mrf.mxu0 }
  0xda   : > { %v963_v34 = vpop.f32.mrf.mxu1  ;;  %521 = vst.msk [vmem:[%s1134_s25] sm:$0xf] %vm520_vm1, %v862_v31  ;;  %v865_v35 = vpack.c.bf16 %v931_v33, %v931_v33 }
  0xdb   : > { %694 = vst.msk [vmem:[%s1129_s22] sm:$0xff] %vm693_vm2, %v615_v32  ;;  %v630_v36 = vadd.f32 %v963_v34, %v1122_v24  ;;  %v387_v37 = vpop.f32.mrf.mxu0 }
  0xdc   : > { %v624_v38 = vpop.f32.mrf.mxu1  ;;  %524 = vst.msk [vmem:[%s1134_s25 + $0xc] sm:$0xf] %vm520_vm1, %v865_v35  ;;  %v864_v39 = vpack.c.bf16 %v387_v37, %v387_v37 }
  0xdd   : > { %697 = vst.msk [vmem:[%s1129_s22 + $0x18] sm:$0xff] %vm693_vm2, %v630_v36  ;;  %v625_v40 = vadd.f32 %v1122_v24, %v624_v38  ;;  %v934_v41 = vpop.f32.mrf.mxu0 }
  0xde   : > { %v966_v42 = vpop.f32.mrf.mxu1  ;;  %523 = vst.msk [vmem:[%s1134_s25 + $0x8] sm:$0xf] %vm520_vm1, %v864_v39  ;;  %v867_v43 = vpack.c.bf16 %v934_v41, %v934_v41 }
  0xdf   : > { %696 = vst.msk [vmem:[%s1129_s22 + $0x10] sm:$0xff] %vm693_vm2, %v625_v40  ;;  %v640_v44 = vadd.f32 %v966_v42, %v1122_v24  ;;  %v397_v45 = vpop.f32.mrf.mxu0 }
  0xe0   : > { %v634_v46 = vpop.f32.mrf.mxu1  ;;  %526 = vst.msk [vmem:[%s1134_s25 + $0x14] sm:$0xf] %vm520_vm1, %v867_v43  ;;  %v866_v47 = vpack.c.bf16 %v397_v45, %v397_v45 }
  0xe1   : > { %699 = vst.msk [vmem:[%s1129_s22 + $0x28] sm:$0xff] %vm693_vm2, %v640_v44  ;;  %v635_v48 = vadd.f32 %v1122_v24, %v634_v46  ;;  %v937_v49 = vpop.f32.mrf.mxu0 }
  0xe2   : > { %v969_v50 = vpop.f32.mrf.mxu1  ;;  %525 = vst.msk [vmem:[%s1134_s25 + $0x10] sm:$0xf] %vm520_vm1, %v866_v47  ;;  %v869_v51 = vpack.c.bf16 %v937_v49, %v937_v49 }
  0xe3   : > { %698 = vst.msk [vmem:[%s1129_s22 + $0x20] sm:$0xff] %vm693_vm2, %v635_v48  ;;  %v650_v52 = vadd.f32 %v969_v50, %v1122_v24  ;;  %v407_v53 = vpop.f32.mrf.mxu0 }
  0xe4   : > { %v644_v54 = vpop.f32.mrf.mxu1  ;;  %528 = vst.msk [vmem:[%s1134_s25 + $0x1c] sm:$0xf] %vm520_vm1, %v869_v51  ;;  %v868_v55 = vpack.c.bf16 %v407_v53, %v407_v53 }
  0xe5   : > { %701 = vst.msk [vmem:[%s1129_s22 + $0x38] sm:$0xff] %vm693_vm2, %v650_v52  ;;  %v645_v56 = vadd.f32 %v1122_v24, %v644_v54  ;;  %v940_v57 = vpop.f32.mrf.mxu0 }
  0xe6   : > { %v972_v58 = vpop.f32.mrf.mxu1  ;;  %527 = vst.msk [vmem:[%s1134_s25 + $0x18] sm:$0xf] %vm520_vm1, %v868_v55  ;;  %v871_v59 = vpack.c.bf16 %v940_v57, %v940_v57 }
  0xe7   : > { %700 = vst.msk [vmem:[%s1129_s22 + $0x30] sm:$0xff] %vm693_vm2, %v645_v56  ;;  %v660_v60 = vadd.f32 %v972_v58, %v1122_v24  ;;  %v417_v61 = vpop.f32.mrf.mxu0 }
  0xe8   : > { %v654_v62 = vpop.f32.mrf.mxu1  ;;  %530 = vst.msk [vmem:[%s1134_s25 + $0x24] sm:$0xf] %vm520_vm1, %v871_v59  ;;  %v870_v63 = vpack.c.bf16 %v417_v61, %v417_v61 }
  0xe9   : > { %703 = vst.msk [vmem:[%s1129_s22 + $0x48] sm:$0xff] %vm693_vm2, %v660_v60  ;;  %v655_v0 = vadd.f32 %v1122_v24, %v654_v62  ;;  %v943_v1 = vpop.f32.mrf.mxu0 }
  0xea   : > { %v975_v2 = vpop.f32.mrf.mxu1  ;;  %529 = vst.msk [vmem:[%s1134_s25 + $0x20] sm:$0xf] %vm520_vm1, %v870_v63  ;;  %v873_v3 = vpack.c.bf16 %v943_v1, %v943_v1 }
  0xeb   : > { %702 = vst.msk [vmem:[%s1129_s22 + $0x40] sm:$0xff] %vm693_vm2, %v655_v0  ;;  %v670_v4 = vadd.f32 %v975_v2, %v1122_v24  ;;  %v427_v5 = vpop.f32.mrf.mxu0 }
  0xec   : > { %v664_v6 = vpop.f32.mrf.mxu1  ;;  %532 = vst.msk [vmem:[%s1134_s25 + $0x2c] sm:$0xf] %vm520_vm1, %v873_v3  ;;  %v872_v7 = vpack.c.bf16 %v427_v5, %v427_v5 }
  0xed   : > { %705 = vst.msk [vmem:[%s1129_s22 + $0x58] sm:$0xff] %vm693_vm2, %v670_v4  ;;  %v665_v8 = vadd.f32 %v1122_v24, %v664_v6  ;;  %v946_v9 = vpop.f32.mrf.mxu0 }
  0xee   : > { %v978_v10 = vpop.f32.mrf.mxu1  ;;  %531 = vst.msk [vmem:[%s1134_s25 + $0x28] sm:$0xf] %vm520_vm1, %v872_v7  ;;  %v875_v11 = vpack.c.bf16 %v946_v9, %v946_v9 }
  0xef   : > { %704 = vst.msk [vmem:[%s1129_s22 + $0x50] sm:$0xff] %vm693_vm2, %v665_v8  ;;  %v680_v12 = vadd.f32 %v978_v10, %v1122_v24  ;;  %v437_v13 = vpop.f32.mrf.mxu0 }
  0xf0   : > { %v674_v14 = vpop.f32.mrf.mxu1  ;;  %534 = vst.msk [vmem:[%s1134_s25 + $0x34] sm:$0xf] %vm520_vm1, %v875_v11  ;;  %v874_v15 = vpack.c.bf16 %v437_v13, %v437_v13 }
  0xf1   : > { %707 = vst.msk [vmem:[%s1129_s22 + $0x68] sm:$0xff] %vm693_vm2, %v680_v12  ;;  %v675_v16 = vadd.f32 %v1122_v24, %v674_v14  ;;  %v949_v17 = vpop.f32.mrf.mxu0 }
  0xf2   : > { %v981_v18 = vpop.f32.mrf.mxu1  ;;  %533 = vst.msk [vmem:[%s1134_s25 + $0x30] sm:$0xf] %vm520_vm1, %v874_v15  ;;  %v877_v19 = vpack.c.bf16 %v949_v17, %v949_v17 }
  0xf3   : > { %706 = vst.msk [vmem:[%s1129_s22 + $0x60] sm:$0xff] %vm693_vm2, %v675_v16  ;;  %v690_v20 = vadd.f32 %v981_v18, %v1122_v24  ;;  %v447_v21 = vpop.f32.mrf.mxu0 }
  0xf4   : > { %v684_v22 = vpop.f32.mrf.mxu1  ;;  %536 = vst.msk [vmem:[%s1134_s25 + $0x3c] sm:$0xf] %vm520_vm1, %v877_v19  ;;  %v876_v23 = vpack.c.bf16 %v447_v21, %v447_v21 }
  0xf5   : > { %709 = vst.msk [vmem:[%s1129_s22 + $0x78] sm:$0xff] %vm693_vm2, %v690_v20  ;;  %v685_v25 = vadd.f32 %v1122_v24, %v684_v22 }
  0xf6   : > { %535 = vst.msk [vmem:[%s1134_s25 + $0x38] sm:$0xf] %vm520_vm1, %v876_v23 }
  0xf7   : > { %708 = vst.msk [vmem:[%s1129_s22 + $0x70] sm:$0xff] %vm693_vm2, %v685_v25 }
  0xf8 PF: > { %s16_s18 = sadd.s32 1, %s996_s18  }
  0xf9   : > { %p13_p4 = scmp.ge.s32.totalorder %s16_s18, 4  }
  0xfb   :  { %15 = sbr.rel (!%p13_p4) target bundleno = 1 (0x1), region = 78 }

// kernel: sageconvnet_forward.5
= control target key start
LH: loop header
LB: loop body
LE: loop exit
PB: predicated region body
PF: predicated region fallthrough
CT: control target
= control target key end

     0   :  { %s1050_s12 = smov 0   ;;  %s1052_s13 = smov 0   ;;  %s1269_s0 = inlined_call_operand.vmem [shape: bf16[256,256], index: 0, kind: input, shape index: {}]   ;;  %s1270_s1 = inlined_call_operand.vmem [shape: bf16[256,16], index: 1, kind: input, shape index: {}]   ;;  %s1271_s2 = inlined_call_operand.vmem [shape: f32[256,16], index: 2, kind: input, shape index: {}]   ;;  %s1272_s3 = inlined_call_operand.vmem [shape: f32[256,16], index: 3, kind: output, shape index: {}]  }
   0x1   :  { %s1054_s14 = smov 0   ;;  %s1056_s15 = smov 0  }
   0x2   :  { %s1058_s16 = smov 0   ;;  %s1060_s17 = smov 0  }
   0x3   :  { %s1062_s18 = smov 0  }
   0x4 LB: > { %s22_s19 = sadd.s32 1, %s1020_s16  ;;  %s25_s20 = sadd.s32 1, %s1024_s17  ;;  %s1028_s18 = sphi %s1062_s18, %s13_s18   ;;  %s1024_s17 = sphi %s1060_s17, %s1278_s17   ;;  %s1020_s16 = sphi %s1058_s16, %s1277_s16   ;;  %s1016_s15 = sphi %s1056_s15, %s1276_s15   ;;  %s1012_s14 = sphi %s1054_s14, %s1275_s14   ;;  %s1008_s13 = sphi %s1052_s13, %s1274_s13   ;;  %s1004_s12 = sphi %s1050_s12, %s1273_s12  }
   0x5   : > { %p23_p0 = scmp.ge.s32.totalorder %s22_s19, 2  ;;  %p41_p1 = scmp.ne.s32.totalorder %s1008_s13, %s1004_s12 }
   0x6   : > { %p42_p2 = scmp.eq.s32.totalorder %s1028_s18, 0  ;;  %s34_s24 = sadd.s32 1, %s1008_s13 }
   0x7   : > { %s1280_s19 = smov (%p23_p0, %s22_s19), 0  ;;  %s1282_s20 = smov (!%p23_p0, %s25_s20), %s1024_s17 }
   0x8   : > { %p43_p3 = por %p42_p2, %p41_p1  ;;  %p27_p4 = scmp.ge.s32.totalorder %s1282_s20, 2 }
   0x9   : > { %s30_s21 = ssub.s32 %s1020_s16, %s1280_s19  ;;  %p804_p6 = scmp.ge.s32.totalorder %s1028_s18, 4 }
   0xa   : > { %s1284_s20 = smov (%p27_p4, %s1282_s20), 0 }
   0xb   : > { %s29_s22 = ssub.s32 %s1024_s17, %s1284_s20  ;;  %145 = sbr.rel (%p804_p6) target bundleno = 32 (0x20), region = 16 }
   0xc   : > { %s31_s23 = sor.u32 %s30_s21, %s29_s22 }
   0xd   : > { %p32_p5 = scmp.eq.s32.totalorder %s31_s23, 0 }
   0xf   : > { %s1101_s25 = scalar_select %p32_p5, %s1008_s13, %s34_s24  }
  0x10   : > { %148 = sbr.rel (!%p43_p3) target bundleno = 32 (0x20), region = 20  ;;  %s150_s26 = sand.u32 (%p43_p3), 1, %s1008_s13  }
  0x11   : > { %s837_s27 = sshll.u32 (%p43_p3), %s1024_s17, 5  ;;  %s805_s28 = sshll.u32 (%p43_p3), %s150_s26, 6 }
  0x12   : > { %s155_s29 = sadd.s32 (%p43_p3), %s1020_s16, %s837_s27  ;;  %s152_s7 = scalar_lea.vmem (%p43_p3), [#allocation3], %s805_s28 }
  0x13   : > { %s808_s30 = sshll.u32 (%p43_p3), %s155_s29, 2 }
  0x14   : > { %s1110_s6 = scalar_lea.vmem (%p43_p3), %s1269_s0, %s808_s30 }
  0x15   : > { %v174_v0 = vld [vmem:[%s1110_s6] sm:$0xf]  ;;  %v176_v1 = vld [vmem:[%s1110_s6 + $0x8] sm:$0xf]  ;;  %v178_v2 = vld [vmem:[%s1110_s6 + $0x10] sm:$0xf] }
  0x16   : > { %175 = vst [vmem:[%s152_s7] sm:$0xf] %v174_v0  ;;  %177 = vst [vmem:[%s152_s7 + $0x4] sm:$0xf] %v176_v1  ;;  %v180_v3 = vld [vmem:[%s1110_s6 + $0x18] sm:$0xf] }
  0x17   : > { %179 = vst [vmem:[%s152_s7 + $0x8] sm:$0xf] %v178_v2  ;;  %v182_v4 = vld [vmem:[%s1110_s6 + $0x20] sm:$0xf]  ;;  %v184_v5 = vld [vmem:[%s1110_s6 + $0x28] sm:$0xf] }
  0x18   : > { %181 = vst [vmem:[%s152_s7 + $0xc] sm:$0xf] %v180_v3  ;;  %183 = vst [vmem:[%s152_s7 + $0x10] sm:$0xf] %v182_v4  ;;  %v186_v6 = vld [vmem:[%s1110_s6 + $0x30] sm:$0xf] }
  0x19   : > { %185 = vst [vmem:[%s152_s7 + $0x14] sm:$0xf] %v184_v5  ;;  %v188_v7 = vld [vmem:[%s1110_s6 + $0x38] sm:$0xf]  ;;  %v190_v8 = vld [vmem:[%s1110_s6 + $0x40] sm:$0xf] }
  0x1a   : > { %187 = vst [vmem:[%s152_s7 + $0x18] sm:$0xf] %v186_v6  ;;  %189 = vst [vmem:[%s152_s7 + $0x1c] sm:$0xf] %v188_v7  ;;  %v192_v9 = vld [vmem:[%s1110_s6 + $0x48] sm:$0xf] }
  0x1b   : > { %191 = vst [vmem:[%s152_s7 + $0x20] sm:$0xf] %v190_v8  ;;  %v194_v10 = vld [vmem:[%s1110_s6 + $0x50] sm:$0xf]  ;;  %v196_v11 = vld [vmem:[%s1110_s6 + $0x58] sm:$0xf] }
  0x1c   : > { %193 = vst [vmem:[%s152_s7 + $0x24] sm:$0xf] %v192_v9  ;;  %195 = vst [vmem:[%s152_s7 + $0x28] sm:$0xf] %v194_v10  ;;  %v198_v12 = vld [vmem:[%s1110_s6 + $0x60] sm:$0xf] }
  0x1d   : > { %197 = vst [vmem:[%s152_s7 + $0x2c] sm:$0xf] %v196_v11  ;;  %v200_v13 = vld [vmem:[%s1110_s6 + $0x68] sm:$0xf]  ;;  %v202_v14 = vld [vmem:[%s1110_s6 + $0x70] sm:$0xf] }
  0x1e   : > { %199 = vst [vmem:[%s152_s7 + $0x30] sm:$0xf] %v198_v12  ;;  %201 = vst [vmem:[%s152_s7 + $0x34] sm:$0xf] %v200_v13  ;;  %v204_v15 = vld [vmem:[%s1110_s6 + $0x78] sm:$0xf] }
  0x1f   : > { %203 = vst [vmem:[%s152_s7 + $0x38] sm:$0xf] %v202_v14  ;;  %205 = vst [vmem:[%s152_s7 + $0x3c] sm:$0xf] %v204_v15 }
  0x20 PF: > { %p809_p7 = scmp.ge.s32.totalorder %s1028_s18, 1  ;;  %p278_p8 = scmp.lt.s32.totalorder %s1028_s18, 5 }
  0x22   : > { %p279_p9 = pnand %p809_p7, %p278_p8 }
  0x23   : > { %s285_s8 = sand.u32 (!%p279_p9), 1, %s1004_s12   ;;  %s811_s9 = sshll.u32 (!%p279_p9), %s1012_s14, 4 }
  0x24   : > { %282 = sbr.rel (%p279_p9) target bundleno = 312 (0x138), region = 69  ;;  %s810_s10 = sshll.u32 (!%p279_p9), %s285_s8, 6 }
  0x25   : > { %p320_p10 = scmp.lt.s32.totalorder (!%p279_p9), %s811_s9, 31  ;;  %s813_s11 = sshll.u32 (!%p279_p9), %s1016_s15, 4 }
  0x26   : > { %p326_p11 = scmp.lt.s32.totalorder (!%p279_p9), %s813_s11, 31  ;;  %s1148_s15 = scalar_lea.vmem (!%p279_p9), [#allocation3], %s810_s10 }
  0x27   : > { %p817_p12 = scmp.ne.s32.totalorder (!%p279_p9), %s1012_s14, 0 }
  0x29   : > { %s1286_s9 = smov (!%p320_p10, %s811_s9), 31  ;;  %s1288_s11 = smov (!%p326_p11, %s813_s11), 31 }
  0x2a   : > { %s812_s21 = sshll.u32 %s1286_s9, 2  ;;  %s814_s26 = sshll.u32 %s1288_s11, 3 }
  0x2b   : > { %s1136_s24 = scalar_lea.vmem %s1270_s1, %s812_s21  ;;  %s1141_s29 = scalar_lea.vmem %s1271_s2, %s814_s26 }
  0x2c   : > { %s1146_s4 = scalar_lea.vmem %s1272_s3, %s814_s26  ;;  %341 = sbr.rel (%p817_p12) target bundleno = 58 (0x3a), region = 77 }
  0x31   : > { %v342_v16 = vld [vmem:[%s1141_s29] sm:$0xff]  ;;  %vm358_vm0 = vcmask 130048   ;;  %v343_v17 = vld [vmem:[%s1141_s29 + $0x8] sm:$0xff]  ;;  %v344_v18 = vld [vmem:[%s1141_s29 + $0x10] sm:$0xff] }
  0x32   : > { %359 = vst.msk [vmem:[#allocation2] sm:$0xff] %vm358_vm0, %v342_v16  ;;  %360 = vst.msk [vmem:[#allocation2 + $0x8] sm:$0xff] %vm358_vm0, %v343_v17  ;;  %v345_v19 = vld [vmem:[%s1141_s29 + $0x18] sm:$0xff]  ;;  %v346_v20 = vld [vmem:[%s1141_s29 + $0x20] sm:$0xff] }
  0x33   : > { %361 = vst.msk [vmem:[#allocation2 + $0x10] sm:$0xff] %vm358_vm0, %v344_v18  ;;  %v347_v21 = vld [vmem:[%s1141_s29 + $0x28] sm:$0xff]  ;;  %362 = vst.msk [vmem:[#allocation2 + $0x18] sm:$0xff] %vm358_vm0, %v345_v19  ;;  %v348_v22 = vld [vmem:[%s1141_s29 + $0x30] sm:$0xff] }
  0x34   : > { %363 = vst.msk [vmem:[#allocation2 + $0x20] sm:$0xff] %vm358_vm0, %v346_v20  ;;  %364 = vst.msk [vmem:[#allocation2 + $0x28] sm:$0xff] %vm358_vm0, %v347_v21  ;;  %v349_v23 = vld [vmem:[%s1141_s29 + $0x38] sm:$0xff]  ;;  %v350_v24 = vld [vmem:[%s1141_s29 + $0x40] sm:$0xff] }
  0x35   : > { %365 = vst.msk [vmem:[#allocation2 + $0x30] sm:$0xff] %vm358_vm0, %v348_v22  ;;  %366 = vst.msk [vmem:[#allocation2 + $0x38] sm:$0xff] %vm358_vm0, %v349_v23  ;;  %v351_v25 = vld [vmem:[%s1141_s29 + $0x48] sm:$0xff]  ;;  %v352_v26 = vld [vmem:[%s1141_s29 + $0x50] sm:$0xff] }
  0x36   : > { %367 = vst.msk [vmem:[#allocation2 + $0x40] sm:$0xff] %vm358_vm0, %v350_v24  ;;  %v353_v27 = vld [vmem:[%s1141_s29 + $0x58] sm:$0xff]  ;;  %368 = vst.msk [vmem:[#allocation2 + $0x48] sm:$0xff] %vm358_vm0, %v351_v25  ;;  %v354_v28 = vld [vmem:[%s1141_s29 + $0x60] sm:$0xff] }
  0x37   : > { %369 = vst.msk [vmem:[#allocation2 + $0x50] sm:$0xff] %vm358_vm0, %v352_v26  ;;  %370 = vst.msk [vmem:[#allocation2 + $0x58] sm:$0xff] %vm358_vm0, %v353_v27  ;;  %v355_v29 = vld [vmem:[%s1141_s29 + $0x68] sm:$0xff]  ;;  %v356_v30 = vld [vmem:[%s1141_s29 + $0x70] sm:$0xff] }
  0x38   : > { %371 = vst.msk [vmem:[#allocation2 + $0x60] sm:$0xff] %vm358_vm0, %v354_v28  ;;  %372 = vst.msk [vmem:[#allocation2 + $0x68] sm:$0xff] %vm358_vm0, %v355_v29  ;;  %v357_v31 = vld [vmem:[%s1141_s29 + $0x78] sm:$0xff] }
  0x39   : > { %373 = vst.msk [vmem:[#allocation2 + $0x70] sm:$0xff] %vm358_vm0, %v356_v30  ;;  %374 = vst.msk [vmem:[#allocation2 + $0x78] sm:$0xff] %vm358_vm0, %v357_v31 }
  0x3a PF: > { %v958_v32 = vld [vmem:[%s1136_s24 + $0x38] sm:$0xff]   ;;  %v959_v33 = vld [vmem:[%s1136_s24 + $0x30] sm:$0xff]   ;;  %v960_v34 = vld [vmem:[%s1136_s24 + $0x28] sm:$0xff]   ;;  %vm632_vm1 = vcmask 130048   ;;  %p834_p13 = scmp.ne.s32.totalorder %s1012_s14, 1 }
  0x3b   : > { %854 = vmatprep.subr.bf16.mxu0 %v958_v32  ;;  %886 = vmatprep.subr.bf16.mxu1 %v958_v32  ;;  %v961_v35 = vld [vmem:[%s1136_s24 + $0x20] sm:$0xff]   ;;  %v962_v38 = vld [vmem:[%s1136_s24 + $0x18] sm:$0xff]   ;;  %v963_v39 = vld [vmem:[%s1136_s24 + $0x10] sm:$0xff]  }
  0x3c   : > { %855 = vmatpush3.bf16.msra.mxu0 %v958_v32  ;;  %894 = vmatpush3.bf16.msra.mxu1 %v958_v32  ;;  %v966_v36 = vld [vmem:[%s1148_s15] sm:$0xff]   ;;  %v964_v40 = vld [vmem:[%s1136_s24 + $0x8] sm:$0xff]   ;;  %v970_v44 = vld [vmem:[%s1148_s15 + $0x10] sm:$0xff]  }
  0x3d   : > { %856 = vmatprep.subr.bf16.mxu0 %v959_v33  ;;  %887 = vmatprep.subr.bf16.mxu1 %v959_v33  ;;  %v967_v37 = vld [vmem:[%s1148_s15 + $0x20] sm:$0xff]   ;;  %v968_v42 = vld [vmem:[%s1148_s15 + $0x8] sm:$0xff]   ;;  %v971_v45 = vld [vmem:[%s1148_s15 + $0x30] sm:$0xff]  }
  0x3e   : > { %870 = vmatprep.mubr.bf16.mxu0 %v966_v36  ;;  %878 = vmatprep.mubr.bf16.mxu1 %v967_v37  ;;  %v965_v41 = vld [vmem:[%s1136_s24] sm:$0xff]   ;;  %v969_v43 = vld [vmem:[%s1148_s15 + $0x28] sm:$0xff]   ;;  %v972_v46 = vld [vmem:[%s1148_s15 + $0x18] sm:$0xff]  }
  0x3f   : > { %v973_v47 = vld [vmem:[%s1148_s15 + $0x38] sm:$0xff]   ;;  %v377_v48 = vld [vmem:[#allocation2 + $0x10] sm:$0xff]  ;;  %v375_v52 = vld [vmem:[#allocation2] sm:$0xff] }
  0x40   : > { %857 = vmatpush3.bf16.msra.mxu0 %v959_v33  ;;  %895 = vmatpush3.bf16.msra.mxu1 %v959_v33  ;;  %v385_v49 = vld [vmem:[#allocation2 + $0x50] sm:$0xff]  ;;  %v383_v53 = vld [vmem:[#allocation2 + $0x40] sm:$0xff]  ;;  %v378_v58 = vld [vmem:[#allocation2 + $0x18] sm:$0xff] }
  0x41   : > { %858 = vmatprep.subr.bf16.mxu0 %v960_v34  ;;  %888 = vmatprep.subr.bf16.mxu1 %v960_v34  ;;  %v386_v59 = vld [vmem:[#allocation2 + $0x58] sm:$0xff]  ;;  %v376_v0 = vld [vmem:[#allocation2 + $0x8] sm:$0xff]  ;;  %v381_v6 = vld [vmem:[#allocation2 + $0x30] sm:$0xff] }
  0x42   : > { %v384_v1 = vld [vmem:[#allocation2 + $0x48] sm:$0xff]  ;;  %v389_v7 = vld [vmem:[#allocation2 + $0x70] sm:$0xff]  ;;  %v379_v12 = vld [vmem:[#allocation2 + $0x20] sm:$0xff] }
  0x43   : > { %v387_v13 = vld [vmem:[#allocation2 + $0x60] sm:$0xff]  ;;  %v382_v18 = vld [vmem:[#allocation2 + $0x38] sm:$0xff]  ;;  %v380_v24 = vld [vmem:[#allocation2 + $0x28] sm:$0xff] }
  0x44   : > { %859 = vmatpush3.bf16.msra.mxu0 %v960_v34  ;;  %896 = vmatpush3.bf16.msra.mxu1 %v960_v34  ;;  %v390_v19 = vld [vmem:[#allocation2 + $0x78] sm:$0xff]  ;;  %v388_v25 = vld [vmem:[#allocation2 + $0x68] sm:$0xff] }
  0x45   : > { %860 = vmatprep.subr.bf16.mxu0 %v961_v35  ;;  %889 = vmatprep.subr.bf16.mxu1 %v961_v35 }
  0x48   : > { %861 = vmatpush3.bf16.msra.mxu0 %v961_v35  ;;  %897 = vmatpush3.bf16.msra.mxu1 %v961_v35 }
  0x49   : > { %862 = vmatprep.subr.bf16.mxu0 %v962_v38  ;;  %890 = vmatprep.subr.bf16.mxu1 %v962_v38 }
  0x4c   : > { %863 = vmatpush3.bf16.msra.mxu0 %v962_v38  ;;  %898 = vmatpush3.bf16.msra.mxu1 %v962_v38 }
  0x4d   : > { %864 = vmatprep.subr.bf16.mxu0 %v963_v39  ;;  %891 = vmatprep.subr.bf16.mxu1 %v963_v39 }
  0x50   : > { %865 = vmatpush3.bf16.msra.mxu0 %v963_v39  ;;  %899 = vmatpush3.bf16.msra.mxu1 %v963_v39 }
  0x51   : > { %866 = vmatprep.subr.bf16.mxu0 %v964_v40  ;;  %892 = vmatprep.subr.bf16.mxu1 %v964_v40 }
  0x54   : > { %867 = vmatpush3.bf16.msra.mxu0 %v964_v40  ;;  %900 = vmatpush3.bf16.msra.mxu1 %v964_v40 }
  0x55   : > { %868 = vmatprep.subr.bf16.mxu0 %v965_v41  ;;  %893 = vmatprep.subr.bf16.mxu1 %v965_v41 }
  0x58   : > { %869 = vmatpush3.bf16.msra.mxu0 %v965_v41  ;;  %901 = vmatpush3.bf16.msra.mxu1 %v965_v41 }
  0x5b   : > { %871 = vmatmul.mubr.bf16.vlgmr.msra.gmra.mxu0 %v968_v42  ;;  %879 = vmatmul.mubr.bf16.vlgmr.msra.gmra.mxu1 %v969_v43 }
  0x5c   : > { %874 = vmatprep.mubr.bf16.mxu0 %v970_v44  ;;  %882 = vmatprep.mubr.bf16.mxu1 %v971_v45 }
  0x63   : > { %875 = vmatmul.mubr.bf16.gmra.mxu0 %v972_v46  ;;  %883 = vmatmul.mubr.bf16.gmra.mxu1 %v973_v47 }
 0x11b   : > { %v872_v50 = vpop.f32.mrf.mxu0  ;;  %v880_v51 = vpop.f32.mrf.mxu1 }
 0x11c   : > { %v618_v54 = vadd.f32 %v872_v50, %v377_v48  ;;  %v626_v55 = vadd.f32 %v880_v51, %v385_v49 }
 0x11d   : > { %v553_v56 = vpop.f32.mrf.mxu0  ;;  %v585_v57 = vpop.f32.mrf.mxu1 }
 0x11e   : > { %635 = vst.msk [vmem:[#allocation2 + $0x10] sm:$0xff] %vm632_vm1, %v618_v54  ;;  %643 = vst.msk [vmem:[#allocation2 + $0x50] sm:$0xff] %vm632_vm1, %v626_v55  ;;  %v616_v60 = vadd.f32 %v553_v56, %v375_v52  ;;  %v624_v61 = vadd.f32 %v585_v57, %v383_v53 }
 0x11f   : > { %v873_v62 = vpop.f32.mrf.mxu0  ;;  %v881_v63 = vpop.f32.mrf.mxu1 }
 0x120   : > { %633 = vst.msk [vmem:[#allocation2] sm:$0xff] %vm632_vm1, %v616_v60  ;;  %641 = vst.msk [vmem:[#allocation2 + $0x40] sm:$0xff] %vm632_vm1, %v624_v61  ;;  %v619_v2 = vadd.f32 %v873_v62, %v378_v58  ;;  %v627_v3 = vadd.f32 %v881_v63, %v386_v59 }
 0x121   : > { %v556_v4 = vpop.f32.mrf.mxu0  ;;  %v588_v5 = vpop.f32.mrf.mxu1 }
 0x122   : > { %636 = vst.msk [vmem:[#allocation2 + $0x18] sm:$0xff] %vm632_vm1, %v619_v2  ;;  %644 = vst.msk [vmem:[#allocation2 + $0x58] sm:$0xff] %vm632_vm1, %v627_v3  ;;  %v617_v8 = vadd.f32 %v556_v4, %v376_v0  ;;  %v625_v9 = vadd.f32 %v588_v5, %v384_v1 }
 0x123   : > { %v876_v10 = vpop.f32.mrf.mxu0  ;;  %v884_v11 = vpop.f32.mrf.mxu1 }
 0x124   : > { %634 = vst.msk [vmem:[#allocation2 + $0x8] sm:$0xff] %vm632_vm1, %v617_v8  ;;  %642 = vst.msk [vmem:[#allocation2 + $0x48] sm:$0xff] %vm632_vm1, %v625_v9  ;;  %v622_v14 = vadd.f32 %v876_v10, %v381_v6  ;;  %v630_v15 = vadd.f32 %v884_v11, %v389_v7 }
 0x125   : > { %v569_v16 = vpop.f32.mrf.mxu0  ;;  %v601_v17 = vpop.f32.mrf.mxu1 }
 0x126   : > { %639 = vst.msk [vmem:[#allocation2 + $0x30] sm:$0xff] %vm632_vm1, %v622_v14  ;;  %647 = vst.msk [vmem:[#allocation2 + $0x70] sm:$0xff] %vm632_vm1, %v630_v15  ;;  %v620_v20 = vadd.f32 %v569_v16, %v379_v12  ;;  %v628_v21 = vadd.f32 %v601_v17, %v387_v13 }
 0x127   : > { %v877_v22 = vpop.f32.mrf.mxu0  ;;  %v885_v23 = vpop.f32.mrf.mxu1 }
 0x128   : > { %637 = vst.msk [vmem:[#allocation2 + $0x20] sm:$0xff] %vm632_vm1, %v620_v20  ;;  %645 = vst.msk [vmem:[#allocation2 + $0x60] sm:$0xff] %vm632_vm1, %v628_v21  ;;  %v623_v26 = vadd.f32 %v877_v22, %v382_v18  ;;  %v631_v27 = vadd.f32 %v885_v23, %v390_v19  ;;  %652 = sbr.rel (%p834_p13) target bundleno = 312 (0x138), region = 81 }
 0x129   : > { %v572_v28 = vpop.f32.mrf.mxu0  ;;  %v604_v29 = vpop.f32.mrf.mxu1 }
 0x12a   : > { %640 = vst.msk [vmem:[#allocation2 + $0x38] sm:$0xff] %vm632_vm1, %v623_v26  ;;  %648 = vst.msk [vmem:[#allocation2 + $0x78] sm:$0xff] %vm632_vm1, %v631_v27  ;;  %v621_v30 = vadd.f32 %v572_v28, %v380_v24  ;;  %v629_v31 = vadd.f32 %v604_v29, %v388_v25 }
 0x12c   : > { %638 = vst.msk [vmem:[#allocation2 + $0x28] sm:$0xff] %vm632_vm1, %v621_v30  ;;  %646 = vst.msk [vmem:[#allocation2 + $0x68] sm:$0xff] %vm632_vm1, %v629_v31 }
 0x12d   : > { %v653_v32 = vld [vmem:[#allocation2] sm:$0xff]  ;;  %v654_v33 = vld [vmem:[#allocation2 + $0x8] sm:$0xff]  ;;  %v655_v34 = vld [vmem:[#allocation2 + $0x10] sm:$0xff] }
 0x12e   : > { %v669_v35 = vmax.f32 %v653_v32, 0.0  ;;  %v670_v36 = vmax.f32 %v654_v33, 0.0  ;;  %v671_v37 = vmax.f32 %v655_v34, 0.0  ;;  %v656_v38 = vld [vmem:[#allocation2 + $0x18] sm:$0xff]  ;;  %v659_v44 = vld [vmem:[#allocation2 + $0x30] sm:$0xff]  ;;  %v661_v46 = vld [vmem:[#allocation2 + $0x40] sm:$0xff] }
 0x12f   : > { %v657_v39 = vld [vmem:[#allocation2 + $0x20] sm:$0xff]  ;;  %v672_v41 = vmax.f32 %v656_v38, 0.0  ;;  %v675_v47 = vmax.f32 %v659_v44, 0.0  ;;  %v677_v49 = vmax.f32 %v661_v46, 0.0  ;;  %v662_v50 = vld [vmem:[#allocation2 + $0x48] sm:$0xff]  ;;  %v663_v51 = vld [vmem:[#allocation2 + $0x50] sm:$0xff] }
 0x130   : > { %v673_v42 = vmax.f32 %v657_v39, 0.0  ;;  %685 = vst.msk [vmem:[%s1146_s4] sm:$0xff] %vm632_vm1, %v669_v35  ;;  %686 = vst.msk [vmem:[%s1146_s4 + $0x8] sm:$0xff] %vm632_vm1, %v670_v36  ;;  %v664_v52 = vld [vmem:[#allocation2 + $0x58] sm:$0xff]  ;;  %v678_v53 = vmax.f32 %v662_v50, 0.0  ;;  %v679_v54 = vmax.f32 %v663_v51, 0.0 }
 0x131   : > { %v660_v45 = vld [vmem:[#allocation2 + $0x38] sm:$0xff]  ;;  %687 = vst.msk [vmem:[%s1146_s4 + $0x10] sm:$0xff] %vm632_vm1, %v671_v37  ;;  %688 = vst.msk [vmem:[%s1146_s4 + $0x18] sm:$0xff] %vm632_vm1, %v672_v41  ;;  %v680_v55 = vmax.f32 %v664_v52, 0.0  ;;  %v665_v56 = vld [vmem:[#allocation2 + $0x60] sm:$0xff] }
 0x132   : > { %v676_v48 = vmax.f32 %v660_v45, 0.0  ;;  %689 = vst.msk [vmem:[%s1146_s4 + $0x20] sm:$0xff] %vm632_vm1, %v673_v42  ;;  %v667_v58 = vld [vmem:[#allocation2 + $0x70] sm:$0xff]  ;;  %691 = vst.msk [vmem:[%s1146_s4 + $0x30] sm:$0xff] %vm632_vm1, %v675_v47  ;;  %v681_v59 = vmax.f32 %v665_v56, 0.0  ;;  %v668_v62 = vld [vmem:[#allocation2 + $0x78] sm:$0xff] }
 0x133   : > { %v658_v40 = vld [vmem:[#allocation2 + $0x28] sm:$0xff]  ;;  %693 = vst.msk [vmem:[%s1146_s4 + $0x40] sm:$0xff] %vm632_vm1, %v677_v49  ;;  %v683_v61 = vmax.f32 %v667_v58, 0.0  ;;  %694 = vst.msk [vmem:[%s1146_s4 + $0x48] sm:$0xff] %vm632_vm1, %v678_v53  ;;  %v684_v63 = vmax.f32 %v668_v62, 0.0 }
 0x134   : > { %v674_v43 = vmax.f32 %v658_v40, 0.0  ;;  %v666_v57 = vld [vmem:[#allocation2 + $0x68] sm:$0xff]  ;;  %692 = vst.msk [vmem:[%s1146_s4 + $0x38] sm:$0xff] %vm632_vm1, %v676_v48  ;;  %695 = vst.msk [vmem:[%s1146_s4 + $0x50] sm:$0xff] %vm632_vm1, %v679_v54 }
 0x135   : > { %v682_v60 = vmax.f32 %v666_v57, 0.0  ;;  %696 = vst.msk [vmem:[%s1146_s4 + $0x58] sm:$0xff] %vm632_vm1, %v680_v55  ;;  %697 = vst.msk [vmem:[%s1146_s4 + $0x60] sm:$0xff] %vm632_vm1, %v681_v59 }
 0x136   : > { %690 = vst.msk [vmem:[%s1146_s4 + $0x28] sm:$0xff] %vm632_vm1, %v674_v43  ;;  %699 = vst.msk [vmem:[%s1146_s4 + $0x70] sm:$0xff] %vm632_vm1, %v683_v61 }
 0x137   : > { %698 = vst.msk [vmem:[%s1146_s4 + $0x68] sm:$0xff] %vm632_vm1, %v682_v60  ;;  %700 = vst.msk [vmem:[%s1146_s4 + $0x78] sm:$0xff] %vm632_vm1, %v684_v63 }
 0x138 PF: > { %s13_s18 = sadd.s32 1, %s1028_s18   ;;  %s1273_s12 = smov %s1008_s13 }
 0x139   : > { %p10_p0 = scmp.ge.s32.totalorder %s13_s18, 6   ;;  %s1274_s13 = smov %s1101_s25 }
 0x13a   : > { %s1275_s14 = smov %s1020_s16  ;;  %s1276_s15 = smov %s1024_s17 }
 0x13b   : > { %s1277_s16 = smov %s1280_s19  ;;  %s1278_s17 = smov %s1284_s20 }
 0x13c   :  { %12 = sbr.rel (!%p10_p0) target bundleno = 4 (0x4), region = 122 }

// kernel: sageconvnet_forward.6
= control target key start
LH: loop header
LB: loop body
LE: loop exit
PB: predicated region body
PF: predicated region fallthrough
CT: control target
= control target key end

     0   :  { %s1012_s18 = smov 0   ;;  %s1191_s0 = inlined_call_operand.vmem [shape: f32[256,16], index: 0, kind: input, shape index: {}]   ;;  %s1192_s1 = inlined_call_operand.vmem [shape: f32[16,4], index: 1, kind: input, shape index: {}]   ;;  %s1193_s2 = inlined_call_operand.vmem [shape: f32[16,4], index: 2, kind: input, shape index: {}]   ;;  %s1194_s3 = inlined_call_operand.vmem [shape: f32[1,4], index: 3, kind: input, shape index: {}]   ;;  %s1195_s4 = inlined_call_operand.vmem [shape: bf16[256,4], index: 4, kind: output, shape index: {0}]   ;;  %s1196_s5 = inlined_call_operand.vmem [shape: f32[256,4], index: 5, kind: output, shape index: {1}]  }
   0x1 LB: > { %s796_s19 = sadd.s32 4294967295, %s980_s18   ;;  %p800_p0 = scmp.ge.s32.totalorder %s980_s18, 1  ;;  %s980_s18 = sphi %s1012_s18, %s16_s18  }
   0x2   : > { %p191_p1 = scmp.lt.s32.totalorder %s980_s18, 3 }
   0x4   : > { %p192_p2 = pnand %p800_p0, %p191_p1 }
   0x5   : > { %s801_s26 = sshll.u32 (!%p192_p2), %s796_s19, 4 }
   0x6   : > { %195 = sbr.rel (%p192_p2) target bundleno = 244 (0xf4), region = 36  ;;  %p225_p3 = scmp.lt.s32.totalorder (!%p192_p2), %s801_s26, 31 }
   0xb   : > { %v259_v0 = vld [vmem:[%s1192_s1 + $0x8] sm:$0xff]  ;;  %v258_v2 = vld [vmem:[%s1192_s1] sm:$0xff]  ;;  %s1198_s26 = smov (!%p225_p3, %s801_s26), 31  ;;  %vm260_vm0 = vcmask 130048   ;;  %vm518_vm1 = vcmask 27648   ;;  %vm689_vm2 = vcmask 31744  }
   0xc   : > { %v536_v1 = vld [vmem:[%s1193_s2 + $0x8] sm:$0xff]  ;;  %910 = vmatprep.subr.mxu0 %v259_v0  ;;  %v535_v3 = vld [vmem:[%s1193_s2] sm:$0xff]  ;;  %s802_s29 = sshll.u32 %s1198_s26, 3  ;;  %s804_s8 = sshll.u32 %s1198_s26, 2 }
   0xd   : > { %938 = vmatprep.subr.mxu1 %v536_v1  ;;  %911 = vmatpush3.msra.mxu0 %v259_v0  ;;  %s1040_s7 = scalar_lea.vmem %s1191_s0, %s802_s29  ;;  %v1094_v20 = vld [vmem:[%s1194_s3] ss:$0 sm:$0xff]  ;;  %s1101_s13 = scalar_lea.vmem %s1196_s5, %s802_s29 }
   0xe   : > { %939 = vmatpush3.msra.mxu1 %v536_v1  ;;  %912 = vmatprep.subr.mxu0 %v258_v2  ;;  %v242_v4 = vld [vmem:[%s1040_s7] sm:$0xff]  ;;  %v243_v5 = vld [vmem:[%s1040_s7 + $0x8] sm:$0xff]  ;;  %v244_v6 = vld [vmem:[%s1040_s7 + $0x10] sm:$0xff]  ;;  %s1106_s16 = scalar_lea.vmem %s1195_s4, %s804_s8 }
   0xf   : > { %940 = vmatprep.subr.mxu1 %v535_v3  ;;  %913 = vmatpush3.msra.mxu0 %v258_v2  ;;  %v245_v7 = vld [vmem:[%s1040_s7 + $0x18] sm:$0xff]  ;;  %v246_v8 = vld [vmem:[%s1040_s7 + $0x20] sm:$0xff]  ;;  %v247_v9 = vld [vmem:[%s1040_s7 + $0x28] sm:$0xff] }
  0x10   : > { %941 = vmatpush3.msra.mxu1 %v535_v3  ;;  %914 = vmatprep.mubr.msk.f32.mxu0 %vm260_vm0, %v242_v4  ;;  %v248_v10 = vld [vmem:[%s1040_s7 + $0x30] sm:$0xff]  ;;  %v249_v11 = vld [vmem:[%s1040_s7 + $0x38] sm:$0xff]  ;;  %v250_v12 = vld [vmem:[%s1040_s7 + $0x40] sm:$0xff] }
  0x11   : > { %942 = vmatprep.mubr.msk.f32.mxu1 %vm260_vm0, %v242_v4  ;;  %915 = vmatmul.mubr.msk.f32.vlgmr.msra.gmra.mxu0 %vm260_vm0, %v243_v5  ;;  %v251_v13 = vld [vmem:[%s1040_s7 + $0x48] sm:$0xff]  ;;  %v252_v14 = vld [vmem:[%s1040_s7 + $0x50] sm:$0xff]  ;;  %v253_v15 = vld [vmem:[%s1040_s7 + $0x58] sm:$0xff] }
  0x12   : > { %943 = vmatmul.mubr.msk.f32.vlgmr.msra.gmra.mxu1 %vm260_vm0, %v243_v5  ;;  %917 = vmatprep.mubr.msk.f32.mxu0 %vm260_vm0, %v244_v6  ;;  %v254_v16 = vld [vmem:[%s1040_s7 + $0x60] sm:$0xff]  ;;  %v255_v17 = vld [vmem:[%s1040_s7 + $0x68] sm:$0xff]  ;;  %v256_v18 = vld [vmem:[%s1040_s7 + $0x70] sm:$0xff] }
  0x13   : > { %945 = vmatprep.mubr.msk.f32.mxu1 %vm260_vm0, %v244_v6  ;;  %v257_v19 = vld [vmem:[%s1040_s7 + $0x78] sm:$0xff] }
  0x15   : > { %918 = vmatmul.mubr.msk.f32.gmra.mxu0 %vm260_vm0, %v245_v7 }
  0x16   : > { %946 = vmatmul.mubr.msk.f32.gmra.mxu1 %vm260_vm0, %v245_v7  ;;  %920 = vmatprep.mubr.msk.f32.mxu0 %vm260_vm0, %v246_v8 }
  0x17   : > { %948 = vmatprep.mubr.msk.f32.mxu1 %vm260_vm0, %v246_v8 }
  0x19   : > { %921 = vmatmul.mubr.msk.f32.gmra.mxu0 %vm260_vm0, %v247_v9 }
  0x1a   : > { %949 = vmatmul.mubr.msk.f32.gmra.mxu1 %vm260_vm0, %v247_v9  ;;  %923 = vmatprep.mubr.msk.f32.mxu0 %vm260_vm0, %v248_v10 }
  0x1b   : > { %951 = vmatprep.mubr.msk.f32.mxu1 %vm260_vm0, %v248_v10 }
  0x1d   : > { %924 = vmatmul.mubr.msk.f32.gmra.mxu0 %vm260_vm0, %v249_v11 }
  0x1e   : > { %952 = vmatmul.mubr.msk.f32.gmra.mxu1 %vm260_vm0, %v249_v11  ;;  %926 = vmatprep.mubr.msk.f32.mxu0 %vm260_vm0, %v250_v12 }
  0x1f   : > { %954 = vmatprep.mubr.msk.f32.mxu1 %vm260_vm0, %v250_v12 }
  0x21   : > { %927 = vmatmul.mubr.msk.f32.gmra.mxu0 %vm260_vm0, %v251_v13 }
  0x22   : > { %955 = vmatmul.mubr.msk.f32.gmra.mxu1 %vm260_vm0, %v251_v13  ;;  %929 = vmatprep.mubr.msk.f32.mxu0 %vm260_vm0, %v252_v14 }
  0x23   : > { %957 = vmatprep.mubr.msk.f32.mxu1 %vm260_vm0, %v252_v14 }
  0x25   : > { %930 = vmatmul.mubr.msk.f32.gmra.mxu0 %vm260_vm0, %v253_v15 }
  0x26   : > { %958 = vmatmul.mubr.msk.f32.gmra.mxu1 %vm260_vm0, %v253_v15  ;;  %932 = vmatprep.mubr.msk.f32.mxu0 %vm260_vm0, %v254_v16 }
  0x27   : > { %960 = vmatprep.mubr.msk.f32.mxu1 %vm260_vm0, %v254_v16 }
  0x29   : > { %933 = vmatmul.mubr.msk.f32.gmra.mxu0 %vm260_vm0, %v255_v17 }
  0x2a   : > { %961 = vmatmul.mubr.msk.f32.gmra.mxu1 %vm260_vm0, %v255_v17  ;;  %935 = vmatprep.mubr.msk.f32.mxu0 %vm260_vm0, %v256_v18 }
  0x2b   : > { %963 = vmatprep.mubr.msk.f32.mxu1 %vm260_vm0, %v256_v18 }
  0x2d   : > { %936 = vmatmul.mubr.msk.f32.gmra.mxu0 %vm260_vm0, %v257_v19 }
  0x2e   : > { %964 = vmatmul.mubr.msk.f32.gmra.mxu1 %vm260_vm0, %v257_v19 }
  0xd1   : > { %v916_v21 = vpop.f32.mrf.mxu0 }
  0xd2   : > { %v944_v22 = vpop.f32.mrf.mxu1  ;;  %v859_v23 = vpack.c.bf16 %v916_v21, %v916_v21 }
  0xd3   : > { %v616_v24 = vadd.f32 %v944_v22, %v1094_v20  ;;  %v375_v25 = vpop.f32.mrf.mxu0 }
  0xd4   : > { %v610_v26 = vpop.f32.mrf.mxu1  ;;  %520 = vst.msk [vmem:[%s1106_s16 + $0x4] sm:$0xf] %vm518_vm1, %v859_v23  ;;  %v858_v27 = vpack.c.bf16 %v375_v25, %v375_v25 }
  0xd5   : > { %691 = vst.msk [vmem:[%s1101_s13 + $0x8] sm:$0xff] %vm689_vm2, %v616_v24  ;;  %v611_v28 = vadd.f32 %v1094_v20, %v610_v26  ;;  %v919_v29 = vpop.f32.mrf.mxu0 }
  0xd6   : > { %v947_v30 = vpop.f32.mrf.mxu1  ;;  %519 = vst.msk [vmem:[%s1106_s16] sm:$0xf] %vm518_vm1, %v858_v27  ;;  %v861_v31 = vpack.c.bf16 %v919_v29, %v919_v29 }
  0xd7   : > { %690 = vst.msk [vmem:[%s1101_s13] sm:$0xff] %vm689_vm2, %v611_v28  ;;  %v626_v32 = vadd.f32 %v947_v30, %v1094_v20  ;;  %v385_v33 = vpop.f32.mrf.mxu0 }
  0xd8   : > { %v620_v34 = vpop.f32.mrf.mxu1  ;;  %522 = vst.msk [vmem:[%s1106_s16 + $0xc] sm:$0xf] %vm518_vm1, %v861_v31  ;;  %v860_v35 = vpack.c.bf16 %v385_v33, %v385_v33 }
  0xd9   : > { %693 = vst.msk [vmem:[%s1101_s13 + $0x18] sm:$0xff] %vm689_vm2, %v626_v32  ;;  %v621_v36 = vadd.f32 %v1094_v20, %v620_v34  ;;  %v922_v37 = vpop.f32.mrf.mxu0 }
  0xda   : > { %v950_v38 = vpop.f32.mrf.mxu1  ;;  %521 = vst.msk [vmem:[%s1106_s16 + $0x8] sm:$0xf] %vm518_vm1, %v860_v35  ;;  %v863_v39 = vpack.c.bf16 %v922_v37, %v922_v37 }
  0xdb   : > { %692 = vst.msk [vmem:[%s1101_s13 + $0x10] sm:$0xff] %vm689_vm2, %v621_v36  ;;  %v636_v40 = vadd.f32 %v950_v38, %v1094_v20  ;;  %v395_v41 = vpop.f32.mrf.mxu0 }
  0xdc   : > { %v630_v42 = vpop.f32.mrf.mxu1  ;;  %524 = vst.msk [vmem:[%s1106_s16 + $0x14] sm:$0xf] %vm518_vm1, %v863_v39  ;;  %v862_v43 = vpack.c.bf16 %v395_v41, %v395_v41 }
  0xdd   : > { %695 = vst.msk [vmem:[%s1101_s13 + $0x28] sm:$0xff] %vm689_vm2, %v636_v40  ;;  %v631_v44 = vadd.f32 %v1094_v20, %v630_v42  ;;  %v925_v45 = vpop.f32.mrf.mxu0 }
  0xde   : > { %v953_v46 = vpop.f32.mrf.mxu1  ;;  %523 = vst.msk [vmem:[%s1106_s16 + $0x10] sm:$0xf] %vm518_vm1, %v862_v43  ;;  %v865_v47 = vpack.c.bf16 %v925_v45, %v925_v45 }
  0xdf   : > { %694 = vst.msk [vmem:[%s1101_s13 + $0x20] sm:$0xff] %vm689_vm2, %v631_v44  ;;  %v646_v48 = vadd.f32 %v953_v46, %v1094_v20  ;;  %v405_v49 = vpop.f32.mrf.mxu0 }
  0xe0   : > { %v640_v50 = vpop.f32.mrf.mxu1  ;;  %526 = vst.msk [vmem:[%s1106_s16 + $0x1c] sm:$0xf] %vm518_vm1, %v865_v47  ;;  %v864_v51 = vpack.c.bf16 %v405_v49, %v405_v49 }
  0xe1   : > { %697 = vst.msk [vmem:[%s1101_s13 + $0x38] sm:$0xff] %vm689_vm2, %v646_v48  ;;  %v641_v52 = vadd.f32 %v1094_v20, %v640_v50  ;;  %v928_v53 = vpop.f32.mrf.mxu0 }
  0xe2   : > { %v956_v54 = vpop.f32.mrf.mxu1  ;;  %525 = vst.msk [vmem:[%s1106_s16 + $0x18] sm:$0xf] %vm518_vm1, %v864_v51  ;;  %v867_v55 = vpack.c.bf16 %v928_v53, %v928_v53 }
  0xe3   : > { %696 = vst.msk [vmem:[%s1101_s13 + $0x30] sm:$0xff] %vm689_vm2, %v641_v52  ;;  %v656_v56 = vadd.f32 %v956_v54, %v1094_v20  ;;  %v415_v57 = vpop.f32.mrf.mxu0 }
  0xe4   : > { %v650_v58 = vpop.f32.mrf.mxu1  ;;  %528 = vst.msk [vmem:[%s1106_s16 + $0x24] sm:$0xf] %vm518_vm1, %v867_v55  ;;  %v866_v59 = vpack.c.bf16 %v415_v57, %v415_v57 }
  0xe5   : > { %699 = vst.msk [vmem:[%s1101_s13 + $0x48] sm:$0xff] %vm689_vm2, %v656_v56  ;;  %v651_v60 = vadd.f32 %v1094_v20, %v650_v58  ;;  %v931_v61 = vpop.f32.mrf.mxu0 }
  0xe6   : > { %v959_v62 = vpop.f32.mrf.mxu1  ;;  %527 = vst.msk [vmem:[%s1106_s16 + $0x20] sm:$0xf] %vm518_vm1, %v866_v59  ;;  %v869_v63 = vpack.c.bf16 %v931_v61, %v931_v61 }
  0xe7   : > { %698 = vst.msk [vmem:[%s1101_s13 + $0x40] sm:$0xff] %vm689_vm2, %v651_v60  ;;  %v666_v0 = vadd.f32 %v959_v62, %v1094_v20  ;;  %v425_v1 = vpop.f32.mrf.mxu0 }
  0xe8   : > { %v660_v2 = vpop.f32.mrf.mxu1  ;;  %530 = vst.msk [vmem:[%s1106_s16 + $0x2c] sm:$0xf] %vm518_vm1, %v869_v63  ;;  %v868_v3 = vpack.c.bf16 %v425_v1, %v425_v1 }
  0xe9   : > { %701 = vst.msk [vmem:[%s1101_s13 + $0x58] sm:$0xff] %vm689_vm2, %v666_v0  ;;  %v661_v4 = vadd.f32 %v1094_v20, %v660_v2  ;;  %v934_v5 = vpop.f32.mrf.mxu0 }
  0xea   : > { %v962_v6 = vpop.f32.mrf.mxu1  ;;  %529 = vst.msk [vmem:[%s1106_s16 + $0x28] sm:$0xf] %vm518_vm1, %v868_v3  ;;  %v871_v7 = vpack.c.bf16 %v934_v5, %v934_v5 }
  0xeb   : > { %700 = vst.msk [vmem:[%s1101_s13 + $0x50] sm:$0xff] %vm689_vm2, %v661_v4  ;;  %v676_v8 = vadd.f32 %v962_v6, %v1094_v20  ;;  %v435_v9 = vpop.f32.mrf.mxu0 }
  0xec   : > { %v670_v10 = vpop.f32.mrf.mxu1  ;;  %532 = vst.msk [vmem:[%s1106_s16 + $0x34] sm:$0xf] %vm518_vm1, %v871_v7  ;;  %v870_v11 = vpack.c.bf16 %v435_v9, %v435_v9 }
  0xed   : > { %703 = vst.msk [vmem:[%s1101_s13 + $0x68] sm:$0xff] %vm689_vm2, %v676_v8  ;;  %v671_v12 = vadd.f32 %v1094_v20, %v670_v10  ;;  %v937_v13 = vpop.f32.mrf.mxu0 }
  0xee   : > { %v965_v14 = vpop.f32.mrf.mxu1  ;;  %531 = vst.msk [vmem:[%s1106_s16 + $0x30] sm:$0xf] %vm518_vm1, %v870_v11  ;;  %v873_v15 = vpack.c.bf16 %v937_v13, %v937_v13 }
  0xef   : > { %702 = vst.msk [vmem:[%s1101_s13 + $0x60] sm:$0xff] %vm689_vm2, %v671_v12  ;;  %v686_v16 = vadd.f32 %v965_v14, %v1094_v20  ;;  %v445_v17 = vpop.f32.mrf.mxu0 }
  0xf0   : > { %v680_v18 = vpop.f32.mrf.mxu1  ;;  %534 = vst.msk [vmem:[%s1106_s16 + $0x3c] sm:$0xf] %vm518_vm1, %v873_v15  ;;  %v872_v19 = vpack.c.bf16 %v445_v17, %v445_v17 }
  0xf1   : > { %705 = vst.msk [vmem:[%s1101_s13 + $0x78] sm:$0xff] %vm689_vm2, %v686_v16  ;;  %v681_v21 = vadd.f32 %v1094_v20, %v680_v18 }
  0xf2   : > { %533 = vst.msk [vmem:[%s1106_s16 + $0x38] sm:$0xf] %vm518_vm1, %v872_v19 }
  0xf3   : > { %704 = vst.msk [vmem:[%s1101_s13 + $0x70] sm:$0xff] %vm689_vm2, %v681_v21 }
  0xf4 PF: > { %s16_s18 = sadd.s32 1, %s980_s18  }
  0xf5   : > { %p13_p4 = scmp.ge.s32.totalorder %s16_s18, 4  }
  0xf7   :  { %15 = sbr.rel (!%p13_p4) target bundleno = 1 (0x1), region = 78 }

// kernel: sageconvnet_forward.7
= control target key start
LH: loop header
LB: loop body
LE: loop exit
PB: predicated region body
PF: predicated region fallthrough
CT: control target
= control target key end

     0   :  { %s1274_s12 = smov 0   ;;  %s1276_s13 = smov 0   ;;  %s1621_s0 = inlined_call_operand.vmem [shape: bf16[256,256], index: 0, kind: input, shape index: {}]   ;;  %s1622_s1 = inlined_call_operand.vmem [shape: bf16[256,4], index: 1, kind: input, shape index: {}]   ;;  %s1623_s2 = inlined_call_operand.vmem [shape: f32[256,4], index: 2, kind: input, shape index: {}]   ;;  %s1624_s3 = inlined_call_operand.vmem [shape: f32[256,4], index: 3, kind: output, shape index: {}]  }
   0x1   :  { %s1278_s14 = smov 0   ;;  %s1280_s15 = smov 0  }
   0x2   :  { %s1282_s16 = smov 0   ;;  %s1284_s17 = smov 0  }
   0x3   :  { %s1286_s18 = smov 0  }
   0x4 LB: > { %s22_s19 = sadd.s32 1, %s1244_s16  ;;  %s25_s20 = sadd.s32 1, %s1248_s17  ;;  %s1252_s18 = sphi %s1286_s18, %s13_s18   ;;  %s1248_s17 = sphi %s1284_s17, %s1630_s17   ;;  %s1244_s16 = sphi %s1282_s16, %s1629_s16   ;;  %s1240_s15 = sphi %s1280_s15, %s1628_s15   ;;  %s1236_s14 = sphi %s1278_s14, %s1627_s14   ;;  %s1232_s13 = sphi %s1276_s13, %s1626_s13   ;;  %s1228_s12 = sphi %s1274_s12, %s1625_s12  }
   0x5   : > { %p23_p0 = scmp.ge.s32.totalorder %s22_s19, 2  ;;  %p41_p1 = scmp.ne.s32.totalorder %s1232_s13, %s1228_s12 }
   0x6   : > { %p42_p2 = scmp.eq.s32.totalorder %s1252_s18, 0  ;;  %s34_s24 = sadd.s32 1, %s1232_s13 }
   0x7   : > { %s1632_s19 = smov (%p23_p0, %s22_s19), 0  ;;  %s1634_s20 = smov (!%p23_p0, %s25_s20), %s1248_s17 }
   0x8   : > { %p43_p3 = por %p42_p2, %p41_p1  ;;  %p27_p4 = scmp.ge.s32.totalorder %s1634_s20, 2 }
   0x9   : > { %s30_s21 = ssub.s32 %s1244_s16, %s1632_s19  ;;  %p964_p6 = scmp.ge.s32.totalorder %s1252_s18, 4 }
   0xa   : > { %s1636_s20 = smov (%p27_p4, %s1634_s20), 0 }
   0xb   : > { %s29_s22 = ssub.s32 %s1248_s17, %s1636_s20  ;;  %145 = sbr.rel (%p964_p6) target bundleno = 32 (0x20), region = 16 }
   0xc   : > { %s31_s23 = sor.u32 %s30_s21, %s29_s22 }
   0xd   : > { %p32_p5 = scmp.eq.s32.totalorder %s31_s23, 0 }
   0xf   : > { %s1325_s25 = scalar_select %p32_p5, %s1232_s13, %s34_s24  }
  0x10   : > { %148 = sbr.rel (!%p43_p3) target bundleno = 32 (0x20), region = 20  ;;  %s150_s26 = sand.u32 (%p43_p3), 1, %s1232_s13  }
  0x11   : > { %s997_s27 = sshll.u32 (%p43_p3), %s1248_s17, 5  ;;  %s965_s28 = sshll.u32 (%p43_p3), %s150_s26, 6 }
  0x12   : > { %s155_s29 = sadd.s32 (%p43_p3), %s1244_s16, %s997_s27  ;;  %s152_s7 = scalar_lea.vmem (%p43_p3), [#allocation3], %s965_s28 }
  0x13   : > { %s968_s30 = sshll.u32 (%p43_p3), %s155_s29, 2 }
  0x14   : > { %s1334_s6 = scalar_lea.vmem (%p43_p3), %s1621_s0, %s968_s30 }
  0x15   : > { %v174_v0 = vld [vmem:[%s1334_s6] sm:$0xf]  ;;  %v176_v1 = vld [vmem:[%s1334_s6 + $0x8] sm:$0xf]  ;;  %v178_v2 = vld [vmem:[%s1334_s6 + $0x10] sm:$0xf] }
  0x16   : > { %175 = vst [vmem:[%s152_s7] sm:$0xf] %v174_v0  ;;  %177 = vst [vmem:[%s152_s7 + $0x4] sm:$0xf] %v176_v1  ;;  %v180_v3 = vld [vmem:[%s1334_s6 + $0x18] sm:$0xf] }
  0x17   : > { %179 = vst [vmem:[%s152_s7 + $0x8] sm:$0xf] %v178_v2  ;;  %v182_v4 = vld [vmem:[%s1334_s6 + $0x20] sm:$0xf]  ;;  %v184_v5 = vld [vmem:[%s1334_s6 + $0x28] sm:$0xf] }
  0x18   : > { %181 = vst [vmem:[%s152_s7 + $0xc] sm:$0xf] %v180_v3  ;;  %183 = vst [vmem:[%s152_s7 + $0x10] sm:$0xf] %v182_v4  ;;  %v186_v6 = vld [vmem:[%s1334_s6 + $0x30] sm:$0xf] }
  0x19   : > { %185 = vst [vmem:[%s152_s7 + $0x14] sm:$0xf] %v184_v5  ;;  %v188_v7 = vld [vmem:[%s1334_s6 + $0x38] sm:$0xf]  ;;  %v190_v8 = vld [vmem:[%s1334_s6 + $0x40] sm:$0xf] }
  0x1a   : > { %187 = vst [vmem:[%s152_s7 + $0x18] sm:$0xf] %v186_v6  ;;  %189 = vst [vmem:[%s152_s7 + $0x1c] sm:$0xf] %v188_v7  ;;  %v192_v9 = vld [vmem:[%s1334_s6 + $0x48] sm:$0xf] }
  0x1b   : > { %191 = vst [vmem:[%s152_s7 + $0x20] sm:$0xf] %v190_v8  ;;  %v194_v10 = vld [vmem:[%s1334_s6 + $0x50] sm:$0xf]  ;;  %v196_v11 = vld [vmem:[%s1334_s6 + $0x58] sm:$0xf] }
  0x1c   : > { %193 = vst [vmem:[%s152_s7 + $0x24] sm:$0xf] %v192_v9  ;;  %195 = vst [vmem:[%s152_s7 + $0x28] sm:$0xf] %v194_v10  ;;  %v198_v12 = vld [vmem:[%s1334_s6 + $0x60] sm:$0xf] }
  0x1d   : > { %197 = vst [vmem:[%s152_s7 + $0x2c] sm:$0xf] %v196_v11  ;;  %v200_v13 = vld [vmem:[%s1334_s6 + $0x68] sm:$0xf]  ;;  %v202_v14 = vld [vmem:[%s1334_s6 + $0x70] sm:$0xf] }
  0x1e   : > { %199 = vst [vmem:[%s152_s7 + $0x30] sm:$0xf] %v198_v12  ;;  %201 = vst [vmem:[%s152_s7 + $0x34] sm:$0xf] %v200_v13  ;;  %v204_v15 = vld [vmem:[%s1334_s6 + $0x78] sm:$0xf] }
  0x1f   : > { %203 = vst [vmem:[%s152_s7 + $0x38] sm:$0xf] %v202_v14  ;;  %205 = vst [vmem:[%s152_s7 + $0x3c] sm:$0xf] %v204_v15 }
  0x20 PF: > { %p969_p7 = scmp.ge.s32.totalorder %s1252_s18, 1  ;;  %p278_p8 = scmp.lt.s32.totalorder %s1252_s18, 5 }
  0x22   : > { %p279_p9 = pnand %p969_p7, %p278_p8 }
  0x23   : > { %s285_s8 = sand.u32 (!%p279_p9), 1, %s1228_s12   ;;  %s971_s9 = sshll.u32 (!%p279_p9), %s1236_s14, 4 }
  0x24   : > { %282 = sbr.rel (%p279_p9) target bundleno = 647 (0x287), region = 69  ;;  %s970_s10 = sshll.u32 (!%p279_p9), %s285_s8, 6 }
  0x25   : > { %p320_p10 = scmp.lt.s32.totalorder (!%p279_p9), %s971_s9, 31  ;;  %s973_s11 = sshll.u32 (!%p279_p9), %s1240_s15, 4 }
  0x26   : > { %p326_p11 = scmp.lt.s32.totalorder (!%p279_p9), %s973_s11, 31  ;;  %s1372_s15 = scalar_lea.vmem (!%p279_p9), [#allocation3], %s970_s10 }
  0x27   : > { %p977_p12 = scmp.ne.s32.totalorder (!%p279_p9), %s1236_s14, 0 }
  0x29   : > { %s1638_s9 = smov (!%p320_p10, %s971_s9), 31  ;;  %s1640_s11 = smov (!%p326_p11, %s973_s11), 31 }
  0x2a   : > { %s972_s21 = sshll.u32 %s1638_s9, 2  ;;  %s974_s26 = sshll.u32 %s1640_s11, 3 }
  0x2b   : > { %s1360_s24 = scalar_lea.vmem %s1622_s1, %s972_s21  ;;  %s1365_s29 = scalar_lea.vmem %s1623_s2, %s974_s26 }
  0x2c   : > { %s1370_s4 = scalar_lea.vmem %s1624_s3, %s974_s26  ;;  %341 = sbr.rel (%p977_p12) target bundleno = 58 (0x3a), region = 77 }
  0x31   : > { %v342_v16 = vld [vmem:[%s1365_s29] sm:$0xff]  ;;  %vm358_vm0 = vcmask 31744   ;;  %v343_v17 = vld [vmem:[%s1365_s29 + $0x8] sm:$0xff]  ;;  %v344_v18 = vld [vmem:[%s1365_s29 + $0x10] sm:$0xff] }
  0x32   : > { %359 = vst.msk [vmem:[#allocation2] sm:$0xff] %vm358_vm0, %v342_v16  ;;  %360 = vst.msk [vmem:[#allocation2 + $0x8] sm:$0xff] %vm358_vm0, %v343_v17  ;;  %v345_v19 = vld [vmem:[%s1365_s29 + $0x18] sm:$0xff]  ;;  %v346_v20 = vld [vmem:[%s1365_s29 + $0x20] sm:$0xff] }
  0x33   : > { %361 = vst.msk [vmem:[#allocation2 + $0x10] sm:$0xff] %vm358_vm0, %v344_v18  ;;  %v347_v21 = vld [vmem:[%s1365_s29 + $0x28] sm:$0xff]  ;;  %362 = vst.msk [vmem:[#allocation2 + $0x18] sm:$0xff] %vm358_vm0, %v345_v19  ;;  %v348_v22 = vld [vmem:[%s1365_s29 + $0x30] sm:$0xff] }
  0x34   : > { %363 = vst.msk [vmem:[#allocation2 + $0x20] sm:$0xff] %vm358_vm0, %v346_v20  ;;  %364 = vst.msk [vmem:[#allocation2 + $0x28] sm:$0xff] %vm358_vm0, %v347_v21  ;;  %v349_v23 = vld [vmem:[%s1365_s29 + $0x38] sm:$0xff]  ;;  %v350_v24 = vld [vmem:[%s1365_s29 + $0x40] sm:$0xff] }
  0x35   : > { %365 = vst.msk [vmem:[#allocation2 + $0x30] sm:$0xff] %vm358_vm0, %v348_v22  ;;  %366 = vst.msk [vmem:[#allocation2 + $0x38] sm:$0xff] %vm358_vm0, %v349_v23  ;;  %v351_v25 = vld [vmem:[%s1365_s29 + $0x48] sm:$0xff]  ;;  %v352_v26 = vld [vmem:[%s1365_s29 + $0x50] sm:$0xff] }
  0x36   : > { %367 = vst.msk [vmem:[#allocation2 + $0x40] sm:$0xff] %vm358_vm0, %v350_v24  ;;  %v353_v27 = vld [vmem:[%s1365_s29 + $0x58] sm:$0xff]  ;;  %368 = vst.msk [vmem:[#allocation2 + $0x48] sm:$0xff] %vm358_vm0, %v351_v25  ;;  %v354_v28 = vld [vmem:[%s1365_s29 + $0x60] sm:$0xff] }
  0x37   : > { %369 = vst.msk [vmem:[#allocation2 + $0x50] sm:$0xff] %vm358_vm0, %v352_v26  ;;  %370 = vst.msk [vmem:[#allocation2 + $0x58] sm:$0xff] %vm358_vm0, %v353_v27  ;;  %v355_v29 = vld [vmem:[%s1365_s29 + $0x68] sm:$0xff]  ;;  %v356_v30 = vld [vmem:[%s1365_s29 + $0x70] sm:$0xff] }
  0x38   : > { %371 = vst.msk [vmem:[#allocation2 + $0x60] sm:$0xff] %vm358_vm0, %v354_v28  ;;  %372 = vst.msk [vmem:[#allocation2 + $0x68] sm:$0xff] %vm358_vm0, %v355_v29  ;;  %v357_v31 = vld [vmem:[%s1365_s29 + $0x78] sm:$0xff] }
  0x39   : > { %373 = vst.msk [vmem:[#allocation2 + $0x70] sm:$0xff] %vm358_vm0, %v356_v30  ;;  %374 = vst.msk [vmem:[#allocation2 + $0x78] sm:$0xff] %vm358_vm0, %v357_v31 }
  0x3a PF: > { %v1118_v32 = vld [vmem:[%s1360_s24 + $0x38] sm:$0xff]   ;;  %v1119_v33 = vld [vmem:[%s1360_s24 + $0x30] sm:$0xff]   ;;  %v1120_v34 = vld [vmem:[%s1360_s24 + $0x28] sm:$0xff]   ;;  %vm632_vm1 = vcmask 31744   ;;  %p994_p13 = scmp.ne.s32.totalorder %s1236_s14, 1 }
  0x3b   : > { %1014 = vmatprep.subr.bf16.mxu0 %v1118_v32  ;;  %1046 = vmatprep.subr.bf16.mxu1 %v1118_v32  ;;  %v1121_v35 = vld [vmem:[%s1360_s24 + $0x20] sm:$0xff]   ;;  %v1122_v38 = vld [vmem:[%s1360_s24 + $0x18] sm:$0xff]   ;;  %v1123_v39 = vld [vmem:[%s1360_s24 + $0x10] sm:$0xff]  }
  0x3c   : > { %1015 = vmatpush3.bf16.msra.mxu0 %v1118_v32  ;;  %1054 = vmatpush3.bf16.msra.mxu1 %v1118_v32  ;;  %v1126_v36 = vld [vmem:[%s1372_s15] sm:$0xff]   ;;  %v1124_v40 = vld [vmem:[%s1360_s24 + $0x8] sm:$0xff]   ;;  %v1130_v44 = vld [vmem:[%s1372_s15 + $0x10] sm:$0xff]  }
  0x3d   : > { %1016 = vmatprep.subr.bf16.mxu0 %v1119_v33  ;;  %1047 = vmatprep.subr.bf16.mxu1 %v1119_v33  ;;  %v1127_v37 = vld [vmem:[%s1372_s15 + $0x20] sm:$0xff]   ;;  %v1128_v42 = vld [vmem:[%s1372_s15 + $0x8] sm:$0xff]   ;;  %v1131_v45 = vld [vmem:[%s1372_s15 + $0x30] sm:$0xff]  }
  0x3e   : > { %1030 = vmatprep.mubr.bf16.mxu0 %v1126_v36  ;;  %1038 = vmatprep.mubr.bf16.mxu1 %v1127_v37  ;;  %v1125_v41 = vld [vmem:[%s1360_s24] sm:$0xff]   ;;  %v1129_v43 = vld [vmem:[%s1372_s15 + $0x28] sm:$0xff]   ;;  %v1132_v46 = vld [vmem:[%s1372_s15 + $0x18] sm:$0xff]  }
  0x3f   : > { %v1133_v47 = vld [vmem:[%s1372_s15 + $0x38] sm:$0xff]   ;;  %v377_v48 = vld [vmem:[#allocation2 + $0x10] sm:$0xff]  ;;  %v375_v52 = vld [vmem:[#allocation2] sm:$0xff] }
  0x40   : > { %1017 = vmatpush3.bf16.msra.mxu0 %v1119_v33  ;;  %1055 = vmatpush3.bf16.msra.mxu1 %v1119_v33  ;;  %v385_v49 = vld [vmem:[#allocation2 + $0x50] sm:$0xff]  ;;  %v383_v53 = vld [vmem:[#allocation2 + $0x40] sm:$0xff]  ;;  %v378_v58 = vld [vmem:[#allocation2 + $0x18] sm:$0xff] }
  0x41   : > { %1018 = vmatprep.subr.bf16.mxu0 %v1120_v34  ;;  %1048 = vmatprep.subr.bf16.mxu1 %v1120_v34  ;;  %v386_v59 = vld [vmem:[#allocation2 + $0x58] sm:$0xff]  ;;  %v376_v0 = vld [vmem:[#allocation2 + $0x8] sm:$0xff]  ;;  %v381_v6 = vld [vmem:[#allocation2 + $0x30] sm:$0xff] }
  0x42   : > { %v384_v1 = vld [vmem:[#allocation2 + $0x48] sm:$0xff]  ;;  %v389_v7 = vld [vmem:[#allocation2 + $0x70] sm:$0xff]  ;;  %v379_v12 = vld [vmem:[#allocation2 + $0x20] sm:$0xff] }
  0x43   : > { %v387_v13 = vld [vmem:[#allocation2 + $0x60] sm:$0xff]  ;;  %v382_v18 = vld [vmem:[#allocation2 + $0x38] sm:$0xff]  ;;  %v380_v24 = vld [vmem:[#allocation2 + $0x28] sm:$0xff] }
  0x44   : > { %1019 = vmatpush3.bf16.msra.mxu0 %v1120_v34  ;;  %1056 = vmatpush3.bf16.msra.mxu1 %v1120_v34  ;;  %v390_v19 = vld [vmem:[#allocation2 + $0x78] sm:$0xff]  ;;  %v388_v25 = vld [vmem:[#allocation2 + $0x68] sm:$0xff] }
  0x45   : > { %1020 = vmatprep.subr.bf16.mxu0 %v1121_v35  ;;  %1049 = vmatprep.subr.bf16.mxu1 %v1121_v35 }
  0x48   : > { %1021 = vmatpush3.bf16.msra.mxu0 %v1121_v35  ;;  %1057 = vmatpush3.bf16.msra.mxu1 %v1121_v35 }
  0x49   : > { %1022 = vmatprep.subr.bf16.mxu0 %v1122_v38  ;;  %1050 = vmatprep.subr.bf16.mxu1 %v1122_v38 }
  0x4c   : > { %1023 = vmatpush3.bf16.msra.mxu0 %v1122_v38  ;;  %1058 = vmatpush3.bf16.msra.mxu1 %v1122_v38 }
  0x4d   : > { %1024 = vmatprep.subr.bf16.mxu0 %v1123_v39  ;;  %1051 = vmatprep.subr.bf16.mxu1 %v1123_v39 }
  0x50   : > { %1025 = vmatpush3.bf16.msra.mxu0 %v1123_v39  ;;  %1059 = vmatpush3.bf16.msra.mxu1 %v1123_v39 }
  0x51   : > { %1026 = vmatprep.subr.bf16.mxu0 %v1124_v40  ;;  %1052 = vmatprep.subr.bf16.mxu1 %v1124_v40 }
  0x54   : > { %1027 = vmatpush3.bf16.msra.mxu0 %v1124_v40  ;;  %1060 = vmatpush3.bf16.msra.mxu1 %v1124_v40 }
  0x55   : > { %1028 = vmatprep.subr.bf16.mxu0 %v1125_v41  ;;  %1053 = vmatprep.subr.bf16.mxu1 %v1125_v41 }
  0x58   : > { %1029 = vmatpush3.bf16.msra.mxu0 %v1125_v41  ;;  %1061 = vmatpush3.bf16.msra.mxu1 %v1125_v41 }
  0x5b   : > { %1031 = vmatmul.mubr.bf16.vlgmr.msra.gmra.mxu0 %v1128_v42  ;;  %1039 = vmatmul.mubr.bf16.vlgmr.msra.gmra.mxu1 %v1129_v43 }
  0x5c   : > { %1034 = vmatprep.mubr.bf16.mxu0 %v1130_v44  ;;  %1042 = vmatprep.mubr.bf16.mxu1 %v1131_v45 }
  0x63   : > { %1035 = vmatmul.mubr.bf16.gmra.mxu0 %v1132_v46  ;;  %1043 = vmatmul.mubr.bf16.gmra.mxu1 %v1133_v47 }
 0x11b   : > { %v1032_v50 = vpop.f32.mrf.mxu0  ;;  %v1040_v51 = vpop.f32.mrf.mxu1 }
 0x11c   : > { %v618_v54 = vadd.f32 %v1032_v50, %v377_v48  ;;  %v626_v55 = vadd.f32 %v1040_v51, %v385_v49 }
 0x11d   : > { %v553_v56 = vpop.f32.mrf.mxu0  ;;  %v585_v57 = vpop.f32.mrf.mxu1 }
 0x11e   : > { %635 = vst.msk [vmem:[#allocation2 + $0x10] sm:$0xff] %vm632_vm1, %v618_v54  ;;  %643 = vst.msk [vmem:[#allocation2 + $0x50] sm:$0xff] %vm632_vm1, %v626_v55  ;;  %v616_v60 = vadd.f32 %v553_v56, %v375_v52  ;;  %v624_v61 = vadd.f32 %v585_v57, %v383_v53 }
 0x11f   : > { %v1033_v62 = vpop.f32.mrf.mxu0  ;;  %v1041_v63 = vpop.f32.mrf.mxu1 }
 0x120   : > { %633 = vst.msk [vmem:[#allocation2] sm:$0xff] %vm632_vm1, %v616_v60  ;;  %641 = vst.msk [vmem:[#allocation2 + $0x40] sm:$0xff] %vm632_vm1, %v624_v61  ;;  %v619_v2 = vadd.f32 %v1033_v62, %v378_v58  ;;  %v627_v3 = vadd.f32 %v1041_v63, %v386_v59 }
 0x121   : > { %v556_v4 = vpop.f32.mrf.mxu0  ;;  %v588_v5 = vpop.f32.mrf.mxu1 }
 0x122   : > { %636 = vst.msk [vmem:[#allocation2 + $0x18] sm:$0xff] %vm632_vm1, %v619_v2  ;;  %644 = vst.msk [vmem:[#allocation2 + $0x58] sm:$0xff] %vm632_vm1, %v627_v3  ;;  %v617_v8 = vadd.f32 %v556_v4, %v376_v0  ;;  %v625_v9 = vadd.f32 %v588_v5, %v384_v1 }
 0x123   : > { %v1036_v10 = vpop.f32.mrf.mxu0  ;;  %v1044_v11 = vpop.f32.mrf.mxu1 }
 0x124   : > { %634 = vst.msk [vmem:[#allocation2 + $0x8] sm:$0xff] %vm632_vm1, %v617_v8  ;;  %642 = vst.msk [vmem:[#allocation2 + $0x48] sm:$0xff] %vm632_vm1, %v625_v9  ;;  %v622_v14 = vadd.f32 %v1036_v10, %v381_v6  ;;  %v630_v15 = vadd.f32 %v1044_v11, %v389_v7 }
 0x125   : > { %v569_v16 = vpop.f32.mrf.mxu0  ;;  %v601_v17 = vpop.f32.mrf.mxu1 }
 0x126   : > { %639 = vst.msk [vmem:[#allocation2 + $0x30] sm:$0xff] %vm632_vm1, %v622_v14  ;;  %647 = vst.msk [vmem:[#allocation2 + $0x70] sm:$0xff] %vm632_vm1, %v630_v15  ;;  %v620_v20 = vadd.f32 %v569_v16, %v379_v12  ;;  %v628_v21 = vadd.f32 %v601_v17, %v387_v13 }
 0x127   : > { %v1037_v22 = vpop.f32.mrf.mxu0  ;;  %v1045_v23 = vpop.f32.mrf.mxu1 }
 0x128   : > { %637 = vst.msk [vmem:[#allocation2 + $0x20] sm:$0xff] %vm632_vm1, %v620_v20  ;;  %645 = vst.msk [vmem:[#allocation2 + $0x60] sm:$0xff] %vm632_vm1, %v628_v21  ;;  %v623_v26 = vadd.f32 %v1037_v22, %v382_v18  ;;  %v631_v27 = vadd.f32 %v1045_v23, %v390_v19  ;;  %652 = sbr.rel (%p994_p13) target bundleno = 647 (0x287), region = 81 }
 0x129   : > { %v572_v28 = vpop.f32.mrf.mxu0  ;;  %v604_v29 = vpop.f32.mrf.mxu1 }
 0x12a   : > { %640 = vst.msk [vmem:[#allocation2 + $0x38] sm:$0xff] %vm632_vm1, %v623_v26  ;;  %648 = vst.msk [vmem:[#allocation2 + $0x78] sm:$0xff] %vm632_vm1, %v631_v27  ;;  %v621_v30 = vadd.f32 %v572_v28, %v380_v24  ;;  %v629_v31 = vadd.f32 %v604_v29, %v388_v25 }
 0x12c   : > { %638 = vst.msk [vmem:[#allocation2 + $0x28] sm:$0xff] %vm632_vm1, %v621_v30  ;;  %646 = vst.msk [vmem:[#allocation2 + $0x68] sm:$0xff] %vm632_vm1, %v629_v31 }
 0x12d   : > { %v653_v32 = vld [vmem:[#allocation2] sm:$0xff]  ;;  %v655_v33 = vld [vmem:[#allocation2 + $0x10] sm:$0xff]  ;;  %v654_v34 = vld [vmem:[#allocation2 + $0x8] sm:$0xff] }
 0x12e   : > { %v669_v35 = vsel %vm632_vm1, %v653_v32, -inf  ;;  %v675_v36 = vsel %vm632_vm1, %v655_v33, -inf  ;;  %v656_v37 = vld [vmem:[#allocation2 + $0x18] sm:$0xff]  ;;  %v672_v38 = vsel %vm632_vm1, %v654_v34, -inf  ;;  %v659_v44 = vld [vmem:[#allocation2 + $0x30] sm:$0xff]  ;;  %v1448_v48 = vld [vmem:[#allocation2 + $0x40] sm:$0xff] }
 0x12f   : > { %670 = vmax.xlane.f32.xlu0 %v669_v35  ;;  %676 = vmax.xlane.f32.xlu1 %v675_v36  ;;  %v678_v39 = vsel %vm632_vm1, %v656_v37, -inf  ;;  %v657_v40 = vld [vmem:[#allocation2 + $0x20] sm:$0xff]  ;;  %v687_v46 = vsel %vm632_vm1, %v659_v44, -inf  ;;  %v1450_v49 = vld [vmem:[#allocation2 + $0x48] sm:$0xff]  ;;  %v693_v50 = vsel %vm632_vm1, %v1448_v48, -inf  ;;  %v1456_v52 = vld [vmem:[#allocation2 + $0x50] sm:$0xff] }
 0x130   : > { %v681_v42 = vsel %vm632_vm1, %v657_v40, -inf  ;;  %v696_v51 = vsel %vm632_vm1, %v1450_v49, -inf  ;;  %v1458_v53 = vld [vmem:[#allocation2 + $0x58] sm:$0xff]  ;;  %v699_v54 = vsel %vm632_vm1, %v1456_v52, -inf  ;;  %v1464_v56 = vld [vmem:[#allocation2 + $0x60] sm:$0xff]  ;;  %v1472_v60 = vld [vmem:[#allocation2 + $0x70] sm:$0xff] }
 0x131   : > { %v660_v45 = vld [vmem:[#allocation2 + $0x38] sm:$0xff]  ;;  %v702_v55 = vsel %vm632_vm1, %v1458_v53, -inf  ;;  %v705_v58 = vsel %vm632_vm1, %v1464_v56, -inf  ;;  %v711_v62 = vsel %vm632_vm1, %v1472_v60, -inf }
 0x132   : > { %v690_v47 = vsel %vm632_vm1, %v660_v45, -inf  ;;  %v1474_v61 = vld [vmem:[#allocation2 + $0x78] sm:$0xff] }
 0x133   : > { %v658_v41 = vld [vmem:[#allocation2 + $0x28] sm:$0xff]  ;;  %673 = vmax.xlane.f32.xlu0 %v672_v38  ;;  %679 = vmax.xlane.f32.xlu1 %v678_v39  ;;  %v714_v63 = vsel %vm632_vm1, %v1474_v61, -inf }
 0x134   : > { %v684_v43 = vsel %vm632_vm1, %v658_v41, -inf  ;;  %v1466_v57 = vld [vmem:[#allocation2 + $0x68] sm:$0xff] }
 0x135   : > { %v708_v59 = vsel %vm632_vm1, %v1466_v57, -inf }
 0x137   : > { %682 = vmax.xlane.f32.xlu0 %v681_v42  ;;  %685 = vmax.xlane.f32.xlu1 %v684_v43 }
 0x13b   : > { %688 = vmax.xlane.f32.xlu0 %v687_v46  ;;  %691 = vmax.xlane.f32.xlu1 %v690_v47 }
 0x13f   : > { %694 = vmax.xlane.f32.xlu0 %v693_v50  ;;  %697 = vmax.xlane.f32.xlu1 %v696_v51 }
 0x143   : > { %700 = vmax.xlane.f32.xlu0 %v699_v54  ;;  %703 = vmax.xlane.f32.xlu1 %v702_v55 }
 0x147   : > { %706 = vmax.xlane.f32.xlu0 %v705_v58  ;;  %709 = vmax.xlane.f32.xlu1 %v708_v59 }
 0x14b   : > { %712 = vmax.xlane.f32.xlu0 %v711_v62  ;;  %715 = vmax.xlane.f32.xlu1 %v714_v63 }
 0x1b8   : > { %v671_v0 = vpop.xlane.xlu0 %670  ;;  %v677_v1 = vpop.xlane.xlu1 %676 }
 0x1b9   : > { %v717_v2 = vsub.f32 %v653_v32, %v671_v0  ;;  %v719_v3 = vsub.f32 %v655_v33, %v677_v1 }
 0x1bb   : > { %v733_v4 = vmul.f32 1.442695, %v717_v2  ;;  %v737_v5 = vmul.f32 1.442695, %v719_v3 }
 0x1bc   : > { %v674_v6 = vpop.xlane.xlu0 %673  ;;  %v680_v7 = vpop.xlane.xlu1 %679 }
 0x1bd   : > { %1134 = vpow2.f32 %v733_v4  ;;  %v718_v8 = vsub.f32 %v654_v34, %v674_v6  ;;  %v720_v9 = vsub.f32 %v656_v37, %v680_v7 }
 0x1be   : > { %1136 = vpow2.f32 %v737_v5 }
 0x1bf   : > { %v735_v10 = vmul.f32 1.442695, %v718_v8  ;;  %v739_v11 = vmul.f32 1.442695, %v720_v9 }
 0x1c0   : > { %v683_v12 = vpop.xlane.xlu0 %682  ;;  %v686_v13 = vpop.xlane.xlu1 %685 }
 0x1c1   : > { %1138 = vpow2.f32 %v735_v10  ;;  %v721_v14 = vsub.f32 %v657_v40, %v683_v12  ;;  %v722_v15 = vsub.f32 %v658_v41, %v686_v13 }
 0x1c2   : > { %1140 = vpow2.f32 %v739_v11 }
 0x1c3   : > { %v741_v16 = vmul.f32 1.442695, %v721_v14  ;;  %v743_v17 = vmul.f32 1.442695, %v722_v15 }
 0x1c4   : > { %v689_v18 = vpop.xlane.xlu0 %688  ;;  %v692_v19 = vpop.xlane.xlu1 %691 }
 0x1c5   : > { %1142 = vpow2.f32 %v741_v16  ;;  %v723_v20 = vsub.f32 %v659_v44, %v689_v18  ;;  %v724_v21 = vsub.f32 %v660_v45, %v692_v19 }
 0x1c6   : > { %1144 = vpow2.f32 %v743_v17 }
 0x1c7   : > { %v745_v22 = vmul.f32 1.442695, %v723_v20  ;;  %v747_v23 = vmul.f32 1.442695, %v724_v21 }
 0x1c8   : > { %v695_v24 = vpop.xlane.xlu0 %694  ;;  %v698_v25 = vpop.xlane.xlu1 %697 }
 0x1c9   : > { %1146 = vpow2.f32 %v745_v22  ;;  %v725_v26 = vsub.f32 %v1448_v48, %v695_v24  ;;  %v726_v27 = vsub.f32 %v1450_v49, %v698_v25 }
 0x1ca   : > { %v1482_v28 = vpop.eup %1134  ;;  %1148 = vpow2.f32 %v747_v23 }
 0x1cb   : > { %v1484_v29 = vpop.eup %1136  ;;  %v749_v30 = vmul.f32 1.442695, %v725_v26  ;;  %v751_v31 = vmul.f32 1.442695, %v726_v27  ;;  %v765_v32 = vsel %vm632_vm1, %v1482_v28, 0.0 }
 0x1cc   : > { %766 = vadd.xlane.f32.xlu0 %v765_v32  ;;  %v701_v33 = vpop.xlane.xlu0 %700  ;;  %v704_v34 = vpop.xlane.xlu1 %703  ;;  %v771_v37 = vsel %vm632_vm1, %v1484_v29, 0.0 }
 0x1cd   : > { %1150 = vpow2.f32 %v749_v30  ;;  %v727_v35 = vsub.f32 %v1456_v52, %v701_v33  ;;  %v728_v36 = vsub.f32 %v1458_v53, %v704_v34 }
 0x1ce   : > { %v1492_v38 = vpop.eup %1138  ;;  %1152 = vpow2.f32 %v751_v31 }
 0x1cf   : > { %v1494_v39 = vpop.eup %1140  ;;  %v753_v40 = vmul.f32 1.442695, %v727_v35  ;;  %v755_v41 = vmul.f32 1.442695, %v728_v36  ;;  %v768_v42 = vsel %vm632_vm1, %v1492_v38, 0.0 }
 0x1d0   : > { %772 = vadd.xlane.f32.xlu0 %v771_v37  ;;  %769 = vadd.xlane.f32.xlu1 %v768_v42  ;;  %v707_v43 = vpop.xlane.xlu0 %706  ;;  %v710_v44 = vpop.xlane.xlu1 %709  ;;  %v774_v47 = vsel %vm632_vm1, %v1494_v39, 0.0 }
 0x1d1   : > { %1154 = vpow2.f32 %v753_v40  ;;  %v729_v45 = vsub.f32 %v1464_v56, %v707_v43  ;;  %v730_v46 = vsub.f32 %v1466_v57, %v710_v44 }
 0x1d2   : > { %v1502_v48 = vpop.eup %1142  ;;  %1156 = vpow2.f32 %v755_v41 }
 0x1d3   : > { %v1504_v49 = vpop.eup %1144  ;;  %v757_v50 = vmul.f32 1.442695, %v729_v45  ;;  %v759_v51 = vmul.f32 1.442695, %v730_v46  ;;  %v777_v52 = vsel %vm632_vm1, %v1502_v48, 0.0 }
 0x1d4   : > { %775 = vadd.xlane.f32.xlu1 %v774_v47  ;;  %778 = vadd.xlane.f32.xlu0 %v777_v52  ;;  %v713_v53 = vpop.xlane.xlu0 %712  ;;  %v716_v54 = vpop.xlane.xlu1 %715  ;;  %v780_v57 = vsel %vm632_vm1, %v1504_v49, 0.0 }
 0x1d5   : > { %1158 = vpow2.f32 %v757_v50  ;;  %v731_v55 = vsub.f32 %v1472_v60, %v713_v53  ;;  %v732_v56 = vsub.f32 %v1474_v61, %v716_v54 }
 0x1d6   : > { %v1512_v58 = vpop.eup %1146  ;;  %1160 = vpow2.f32 %v759_v51 }
 0x1d7   : > { %v1514_v59 = vpop.eup %1148  ;;  %v761_v62 = vmul.f32 1.442695, %v731_v55  ;;  %v763_v63 = vmul.f32 1.442695, %v732_v56  ;;  %v783_v0 = vsel %vm632_vm1, %v1512_v58, 0.0 }
 0x1d8   : > { %781 = vadd.xlane.f32.xlu1 %v780_v57  ;;  %784 = vadd.xlane.f32.xlu0 %v783_v0  ;;  %v786_v60 = vsel %vm632_vm1, %v1514_v59, 0.0 }
 0x1d9   : > { %1162 = vpow2.f32 %v761_v62 }
 0x1da   : > { %v1520_v61 = vpop.eup %1150  ;;  %1164 = vpow2.f32 %v763_v63 }
 0x1db   : > { %v1522_v1 = vpop.eup %1152  ;;  %v789_v2 = vsel %vm632_vm1, %v1520_v61, 0.0 }
 0x1dc   : > { %787 = vadd.xlane.f32.xlu1 %v786_v60  ;;  %790 = vadd.xlane.f32.xlu0 %v789_v2  ;;  %v792_v3 = vsel %vm632_vm1, %v1522_v1, 0.0 }
 0x1de   : > { %v1528_v4 = vpop.eup %1154 }
 0x1df   : > { %v1530_v5 = vpop.eup %1156  ;;  %v795_v6 = vsel %vm632_vm1, %v1528_v4, 0.0 }
 0x1e0   : > { %793 = vadd.xlane.f32.xlu1 %v792_v3  ;;  %796 = vadd.xlane.f32.xlu0 %v795_v6  ;;  %v798_v7 = vsel %vm632_vm1, %v1530_v5, 0.0 }
 0x1e2   : > { %v1536_v8 = vpop.eup %1158 }
 0x1e3   : > { %v1538_v9 = vpop.eup %1160  ;;  %v801_v10 = vsel %vm632_vm1, %v1536_v8, 0.0 }
 0x1e4   : > { %799 = vadd.xlane.f32.xlu1 %v798_v7  ;;  %802 = vadd.xlane.f32.xlu0 %v801_v10  ;;  %v804_v11 = vsel %vm632_vm1, %v1538_v9, 0.0 }
 0x1e6   : > { %v1544_v12 = vpop.eup %1162 }
 0x1e7   : > { %v1546_v13 = vpop.eup %1164  ;;  %v807_v14 = vsel %vm632_vm1, %v1544_v12, 0.0 }
 0x1e8   : > { %805 = vadd.xlane.f32.xlu1 %v804_v11  ;;  %808 = vadd.xlane.f32.xlu0 %v807_v14  ;;  %v810_v15 = vsel %vm632_vm1, %v1546_v13, 0.0 }
 0x1ec   : > { %811 = vadd.xlane.f32.xlu1 %v810_v15 }
 0x255   : > { %v767_v16 = vpop.xlane.xlu0 %766 }
 0x256   : > { %1166 = vrcp.f32 %v767_v16 }
 0x259   : > { %v770_v17 = vpop.xlane.xlu1 %769  ;;  %v773_v18 = vpop.xlane.xlu0 %772 }
 0x25a   : > { %1168 = vrcp.f32 %v770_v17 }
 0x25b   : > { %1170 = vrcp.f32 %v773_v18 }
 0x25d   : > { %v776_v19 = vpop.xlane.xlu1 %775  ;;  %v779_v20 = vpop.xlane.xlu0 %778 }
 0x25e   : > { %1172 = vrcp.f32 %v776_v19 }
 0x25f   : > { %1174 = vrcp.f32 %v779_v20 }
 0x261   : > { %v782_v21 = vpop.xlane.xlu1 %781  ;;  %v785_v22 = vpop.xlane.xlu0 %784 }
 0x262   : > { %1176 = vrcp.f32 %v782_v21 }
 0x263   : > { %v1167_v23 = vpop.eup %1166  ;;  %1178 = vrcp.f32 %v785_v22 }
 0x264   : > { %v814_v24 = vmul.f32 %v1167_v23, %v1482_v28 }
 0x265   : > { %v788_v25 = vpop.xlane.xlu1 %787  ;;  %v791_v26 = vpop.xlane.xlu0 %790 }
 0x266   : > { %845 = vst.msk [vmem:[%s1370_s4] sm:$0xff] %vm632_vm1, %v814_v24  ;;  %1180 = vrcp.f32 %v788_v25 }
 0x267   : > { %v1169_v27 = vpop.eup %1168  ;;  %1182 = vrcp.f32 %v791_v26 }
 0x268   : > { %v1171_v30 = vpop.eup %1170  ;;  %v816_v31 = vmul.f32 %v1169_v27, %v1492_v38 }
 0x269   : > { %v818_v32 = vmul.f32 %v1171_v30, %v1484_v29  ;;  %v794_v33 = vpop.xlane.xlu1 %793  ;;  %v797_v34 = vpop.xlane.xlu0 %796 }
 0x26a   : > { %846 = vst.msk [vmem:[%s1370_s4 + $0x8] sm:$0xff] %vm632_vm1, %v816_v31  ;;  %1184 = vrcp.f32 %v794_v33 }
 0x26b   : > { %v1173_v28 = vpop.eup %1172  ;;  %847 = vst.msk [vmem:[%s1370_s4 + $0x10] sm:$0xff] %vm632_vm1, %v818_v32  ;;  %1186 = vrcp.f32 %v797_v34 }
 0x26c   : > { %v1175_v35 = vpop.eup %1174  ;;  %v820_v36 = vmul.f32 %v1173_v28, %v1494_v39 }
 0x26d   : > { %v822_v37 = vmul.f32 %v1175_v35, %v1502_v48  ;;  %v800_v38 = vpop.xlane.xlu1 %799  ;;  %v803_v40 = vpop.xlane.xlu0 %802 }
 0x26e   : > { %848 = vst.msk [vmem:[%s1370_s4 + $0x18] sm:$0xff] %vm632_vm1, %v820_v36  ;;  %1188 = vrcp.f32 %v800_v38 }
 0x26f   : > { %v1177_v29 = vpop.eup %1176  ;;  %849 = vst.msk [vmem:[%s1370_s4 + $0x20] sm:$0xff] %vm632_vm1, %v822_v37  ;;  %1190 = vrcp.f32 %v803_v40 }
 0x270   : > { %v1179_v41 = vpop.eup %1178  ;;  %v824_v42 = vmul.f32 %v1177_v29, %v1504_v49 }
 0x271   : > { %v826_v43 = vmul.f32 %v1179_v41, %v1512_v58  ;;  %v806_v39 = vpop.xlane.xlu1 %805  ;;  %v809_v44 = vpop.xlane.xlu0 %808 }
 0x272   : > { %850 = vst.msk [vmem:[%s1370_s4 + $0x28] sm:$0xff] %vm632_vm1, %v824_v42  ;;  %1192 = vrcp.f32 %v806_v39 }
 0x273   : > { %v1181_v45 = vpop.eup %1180  ;;  %851 = vst.msk [vmem:[%s1370_s4 + $0x30] sm:$0xff] %vm632_vm1, %v826_v43  ;;  %1194 = vrcp.f32 %v809_v44 }
 0x274   : > { %v1183_v46 = vpop.eup %1182  ;;  %v828_v47 = vmul.f32 %v1181_v45, %v1514_v59 }
 0x275   : > { %v830_v48 = vmul.f32 %v1183_v46, %v1520_v61  ;;  %v812_v49 = vpop.xlane.xlu1 %811 }
 0x276   : > { %852 = vst.msk [vmem:[%s1370_s4 + $0x38] sm:$0xff] %vm632_vm1, %v828_v47  ;;  %1196 = vrcp.f32 %v812_v49 }
 0x277   : > { %v1185_v50 = vpop.eup %1184  ;;  %853 = vst.msk [vmem:[%s1370_s4 + $0x40] sm:$0xff] %vm632_vm1, %v830_v48 }
 0x278   : > { %v1187_v51 = vpop.eup %1186  ;;  %v832_v52 = vmul.f32 %v1185_v50, %v1522_v1 }
 0x279   : > { %v834_v53 = vmul.f32 %v1187_v51, %v1528_v4 }
 0x27a   : > { %854 = vst.msk [vmem:[%s1370_s4 + $0x48] sm:$0xff] %vm632_vm1, %v832_v52 }
 0x27b   : > { %v1189_v54 = vpop.eup %1188  ;;  %855 = vst.msk [vmem:[%s1370_s4 + $0x50] sm:$0xff] %vm632_vm1, %v834_v53 }
 0x27c   : > { %v1191_v55 = vpop.eup %1190  ;;  %v836_v56 = vmul.f32 %v1189_v54, %v1530_v5 }
 0x27d   : > { %v838_v57 = vmul.f32 %v1191_v55, %v1536_v8 }
 0x27e   : > { %856 = vst.msk [vmem:[%s1370_s4 + $0x58] sm:$0xff] %vm632_vm1, %v836_v56 }
 0x27f   : > { %v1193_v58 = vpop.eup %1192  ;;  %857 = vst.msk [vmem:[%s1370_s4 + $0x60] sm:$0xff] %vm632_vm1, %v838_v57 }
 0x280   : > { %v1195_v59 = vpop.eup %1194  ;;  %v840_v62 = vmul.f32 %v1193_v58, %v1538_v9 }
 0x281   : > { %v842_v63 = vmul.f32 %v1195_v59, %v1544_v12 }
 0x282   : > { %858 = vst.msk [vmem:[%s1370_s4 + $0x68] sm:$0xff] %vm632_vm1, %v840_v62 }
 0x283   : > { %v1197_v0 = vpop.eup %1196  ;;  %859 = vst.msk [vmem:[%s1370_s4 + $0x70] sm:$0xff] %vm632_vm1, %v842_v63 }
 0x284   : > { %v844_v60 = vmul.f32 %v1197_v0, %v1546_v13 }
 0x286   : > { %860 = vst.msk [vmem:[%s1370_s4 + $0x78] sm:$0xff] %vm632_vm1, %v844_v60 }
 0x287 PF: > { %s13_s18 = sadd.s32 1, %s1252_s18   ;;  %s1625_s12 = smov %s1232_s13 }
 0x288   : > { %p10_p0 = scmp.ge.s32.totalorder %s13_s18, 6   ;;  %s1626_s13 = smov %s1325_s25 }
 0x289   : > { %s1627_s14 = smov %s1244_s16  ;;  %s1628_s15 = smov %s1248_s17 }
 0x28a   : > { %s1629_s16 = smov %s1632_s19  ;;  %s1630_s17 = smov %s1636_s20 }
 0x28b   :  { %12 = sbr.rel (!%p10_p0) target bundleno = 4 (0x4), region = 122 }

</bundles_post_ra>
